<compile_context>
chip_gen: v7x
topology: tpu7x:2x2x1
jax: 0.10.0
libtpu: 0.0.40
codegen_flags: <defaults>
</compile_context>

<pallas_src>
import functools

import jax
import jax.numpy as jnp
from jax import lax
from jax.experimental import pallas as pl
from jax.experimental.pallas import tpu as pltpu

TEMPERATURE = 0.07
BASE_TEMPERATURE = 0.07  # unused by forward math (matches the PyTorch module)
EPS = 1e-12
NEG_MASK_VAL = -10.0


def _contrastive_loss_kernel(q_ref, k_ref, out_ref, *, temperature, tq):
    j = pl.program_id(1)

    q = q_ref[0].astype(jnp.float32)  # (C, tq)
    k = k_ref[0].astype(jnp.float32)  # (C, S)

    inv_t = 1.0 / temperature

    # F.normalize(p=1, dim=-1): divide by max(sum |x| over C, eps); C is axis 0 here.
    # Fold 1/temperature into the query side so no S*S scaling pass is needed.
    qn = q / jnp.maximum(jnp.sum(jnp.abs(q), axis=0, keepdims=True), EPS)
    qn = qn * inv_t
    kn = k / jnp.maximum(jnp.sum(jnp.abs(k), axis=0, keepdims=True), EPS)

    # logits = (q_n^T @ k_n) / T  -> (tq, S); contraction over C (dim 0 of both operands).
    logits = lax.dot_general(
        qn,
        kn,
        dimension_numbers=(((0,), (0,)), ((), ())),
        preferred_element_type=jnp.float32,
    )

    s_total = kn.shape[1]
    row_ids = j * tq + lax.broadcasted_iota(jnp.int32, (tq, 1), 0)   # global query rows
    col_ids = lax.broadcasted_iota(jnp.int32, (1, s_total), 1)
    logits = jnp.where(row_ids == col_ids, NEG_MASK_VAL * inv_t, logits)

    # Cross-entropy with target class 0 whose logit is exactly 0:
    #   loss_row = logsumexp([0, logits_row]) - 0
    m = jnp.maximum(jnp.max(logits, axis=-1, keepdims=True), 0.0)    # (tq, 1)
    lse = m + jnp.log(
        jnp.exp(-m) + jnp.sum(jnp.exp(logits - m), axis=-1, keepdims=True)
    )

    partial = jnp.sum(lse)                                           # scalar partial sum
    out_ref[...] = jnp.broadcast_to(partial, out_ref.shape).astype(jnp.float32)


def _pick_tq(s):
    # Row-tile size: multiple of 128 dividing S (bounded so (tq, S) temps stay VMEM-friendly),
    # otherwise fall back to the full S (block == full array dim is always legal).
    cands = (512, 256, 128) if s <= 1024 else (256, 128)
    for c in cands:
        if s % c == 0:
            return c
    return s


def contrastive_loss_sup(feat_q, feat_k, temperature=TEMPERATURE):
    assert feat_q.shape == feat_k.shape, (feat_q.shape, feat_k.shape)
    B, C, H, W = feat_q.shape
    S = H * W

    # NCHW -> (B, C, S): free reshape, no transpose or dtype conversion pass over HBM.
    q = feat_q.reshape(B, C, S)
    k = feat_k.reshape(B, C, S)

    tq = _pick_tq(S)
    num_tq = S // tq

    kernel = functools.partial(
        _contrastive_loss_kernel, temperature=float(temperature), tq=tq
    )

    # Size the scoped VMEM limit to the actual working set (double-buffered inputs +
    # (tq, S) logits/exp temporaries + headroom) instead of relying on chip defaults.
    itemsize = 4
    vmem_est = (
        2 * C * S * itemsize        # double-buffered K block
        + 2 * C * tq * itemsize     # double-buffered Q block
        + 6 * tq * S * itemsize     # logits / exp / mask temporaries
        + (2 << 20)                 # headroom
    )
    vmem_limit = int(min(64 << 20, max(32 << 20, vmem_est)))

    partials = pl.pallas_call(
        kernel,
        out_shape=jax.ShapeDtypeStruct((B, num_tq, 128), jnp.float32),
        grid_spec=pltpu.PrefetchScalarGridSpec(
            num_scalar_prefetch=0,
            grid=(B, num_tq),
            in_specs=[
                pl.BlockSpec((1, C, tq), lambda b, j: (b, 0, j)),
                pl.BlockSpec((1, C, S), lambda b, j: (b, 0, 0)),
            ],
            out_specs=pl.BlockSpec((1, 1, 128), lambda b, j: (b, j, 0)),
        ),
        compiler_params=pltpu.CompilerParams(
            dimension_semantics=("parallel", "parallel"),
            vmem_limit_bytes=vmem_limit,
        ),
    )(q, k)

    # Each grid point wrote its scalar partial broadcast across 128 lanes; take lane 0.
    return jnp.sum(partials[:, :, 0]) / float(B * S)


def _reference_loss(feat_q, feat_k, temperature=TEMPERATURE):
    # Pure-JAX mirror of the PyTorch forward, for correctness checking.
    B, C, H, W = feat_q.shape
    S = H * W
    q = jnp.transpose(feat_q.reshape(B, C, S), (0, 2, 1)).astype(jnp.float32)
    k = jnp.transpose(feat_k.reshape(B, C, S), (0, 2, 1)).astype(jnp.float32)
    q = q / jnp.maximum(jnp.sum(jnp.abs(q), axis=-1, keepdims=True), EPS)
    k = k / jnp.maximum(jnp.sum(jnp.abs(k), axis=-1, keepdims=True), EPS)
    l_neg = jnp.einsum("bsd,btd->bst", q, k)
    eye = jnp.eye(S, dtype=bool)[None]
    l_neg = jnp.where(eye, NEG_MASK_VAL, l_neg).reshape(B * S, S)
    out = jnp.concatenate([jnp.zeros((B * S, 1), jnp.float32), l_neg], axis=1) / temperature
    lse = jax.scipy.special.logsumexp(out, axis=1)
    return jnp.mean(lse - out[:, 0])


if __name__ == "__main__":
    key = jax.random.PRNGKey(0)
    k1, k2, k3, k4 = jax.random.split(key, 4)

    # Primary small shapes: batch=2, channels=4, 16x16 spatial -> 256 patches per image.
    feat_q = jax.random.normal(k1, (2, 4, 16, 16), dtype=jnp.float32)
    feat_k = jax.random.normal(k2, (2, 4, 16, 16), dtype=jnp.float32)
    loss = contrastive_loss_sup(feat_q, feat_k)
    jax.block_until_ready(loss)
    ref = _reference_loss(feat_q, feat_k)
    assert jnp.allclose(loss, ref, rtol=1e-5, atol=1e-5), (float(loss), float(ref))

    # Second shape exercises the query-row tiling path (S=768 -> 3 row tiles of 256).
    feat_q2 = jax.random.normal(k3, (1, 8, 16, 48), dtype=jnp.float32)
    feat_k2 = jax.random.normal(k4, (1, 8, 16, 48), dtype=jnp.float32)
    loss2 = contrastive_loss_sup(feat_q2, feat_k2)
    jax.block_until_ready(loss2)
    ref2 = _reference_loss(feat_q2, feat_k2)
    assert jnp.allclose(loss2, ref2, rtol=1e-5, atol=1e-5), (float(loss2), float(ref2))

    print("KERNEL_OK")
</pallas_src>

<mosaic_0001>
module attributes {stable_mosaic.version = 11 : i64} {
  func.func @_contrastive_loss_kernel(%arg0: i32, %arg1: i32, %arg2: memref<1x4x256xf32, #tpu.memory_space<vmem>>, %arg3: memref<1x4x256xf32, #tpu.memory_space<vmem>>, %arg4: memref<1x1x128xf32, #tpu.memory_space<vmem>>) attributes {dimension_semantics = [#tpu.dimension_semantics<parallel>, #tpu.dimension_semantics<parallel>], iteration_bounds = array<i64: 2, 1>, scalar_prefetch = 0 : i64, scratch_operands = 0 : i64, tpu.core_type = #tpu.core_type<tc>, window_params = [{transform_indices = @transform_0, window_bounds = array<i64: 1, 4, 256>}, {transform_indices = @transform_1, window_bounds = array<i64: 1, 4, 256>}, {transform_indices = @transform_2, window_bounds = array<i64: 1, 1, 128>}]} {
    %c0 = arith.constant 0 : index
    %c0_0 = arith.constant 0 : index
    %c0_1 = arith.constant 0 : index
    %0 = vector.load %arg2[%c0, %c0_0, %c0_1] : memref<1x4x256xf32, #tpu.memory_space<vmem>>, vector<1x4x256xf32>
    %1 = vector.shape_cast %0 : vector<1x4x256xf32> to vector<4x256xf32>
    %c0_2 = arith.constant 0 : index
    %c0_3 = arith.constant 0 : index
    %c0_4 = arith.constant 0 : index
    %2 = vector.load %arg3[%c0_2, %c0_3, %c0_4] : memref<1x4x256xf32, #tpu.memory_space<vmem>>, vector<1x4x256xf32>
    %3 = vector.shape_cast %2 : vector<1x4x256xf32> to vector<4x256xf32>
    %4 = math.absf %1 : vector<4x256xf32>
    %cst = arith.constant dense<0.000000e+00> : vector<256xf32>
    %5 = vector.multi_reduction <add>, %4, %cst [0] : vector<4x256xf32> to vector<256xf32>
    %6 = vector.shape_cast %5 : vector<256xf32> to vector<1x256xf32>
    %cst_5 = arith.constant 9.99999996E-13 : f32
    %7 = vector.broadcast %cst_5 : f32 to vector<1x256xf32>
    %8 = arith.maximumf %6, %7 : vector<1x256xf32>
    %9 = vector.broadcast %8 : vector<1x256xf32> to vector<4x256xf32>
    %10 = arith.divf %1, %9 : vector<4x256xf32>
    %cst_6 = arith.constant 14.2857141 : f32
    %11 = vector.broadcast %cst_6 : f32 to vector<4x256xf32>
    %12 = arith.mulf %10, %11 : vector<4x256xf32>
    %13 = math.absf %3 : vector<4x256xf32>
    %cst_7 = arith.constant dense<0.000000e+00> : vector<256xf32>
    %14 = vector.multi_reduction <add>, %13, %cst_7 [0] : vector<4x256xf32> to vector<256xf32>
    %15 = vector.shape_cast %14 : vector<256xf32> to vector<1x256xf32>
    %cst_8 = arith.constant 9.99999996E-13 : f32
    %16 = vector.broadcast %cst_8 : f32 to vector<1x256xf32>
    %17 = arith.maximumf %15, %16 : vector<1x256xf32>
    %18 = vector.broadcast %17 : vector<1x256xf32> to vector<4x256xf32>
    %19 = arith.divf %3, %18 : vector<4x256xf32>
    %cst_9 = arith.constant dense<0.000000e+00> : vector<256x256xf32>
    %20 = tpu.matmul %12, %19, %cst_9 {dimension_numbers = #tpu.dot_dimension_numbers<[0], [0], [1], [1], [0, 1, 1, 1], [], []>} : vector<4x256xf32>, vector<4x256xf32>, vector<256x256xf32> -> vector<256x256xf32>
    %c256_i32 = arith.constant 256 : i32
    %21 = arith.muli %arg1, %c256_i32 : i32
    %22 = tpu.iota {dimensions = array<i32: 0>} : vector<256x1xi32>
    %23 = vector.broadcast %21 : i32 to vector<256x1xi32>
    %24 = arith.addi %23, %22 : vector<256x1xi32>
    %25 = tpu.iota {dimensions = array<i32: 1>} : vector<1x256xi32>
    %26 = vector.broadcast %24 : vector<256x1xi32> to vector<256x256xi32>
    %27 = vector.broadcast %25 : vector<1x256xi32> to vector<256x256xi32>
    %28 = arith.cmpi eq, %26, %27 : vector<256x256xi32>
    %cst_10 = arith.constant -142.857147 : f32
    %29 = vector.broadcast %cst_10 : f32 to vector<256x256xf32>
    %30 = arith.select %28, %29, %20 : vector<256x256xi1>, vector<256x256xf32>
    %cst_11 = arith.constant dense<0xFF800000> : vector<256xf32>
    %31 = vector.multi_reduction <maximumf>, %30, %cst_11 [1] : vector<256x256xf32> to vector<256xf32>
    %32 = vector.shape_cast %31 : vector<256xf32> to vector<256x1xf32>
    %cst_12 = arith.constant 0.000000e+00 : f32
    %33 = vector.broadcast %cst_12 : f32 to vector<256x1xf32>
    %34 = arith.maximumf %32, %33 : vector<256x1xf32>
    %cst_13 = arith.constant 0.000000e+00 : f32
    %35 = vector.broadcast %cst_13 : f32 to vector<256x1xf32>
    %36 = arith.subf %35, %34 : vector<256x1xf32>
    %37 = math.exp %36 : vector<256x1xf32>
    %38 = vector.broadcast %34 : vector<256x1xf32> to vector<256x256xf32>
    %39 = arith.subf %30, %38 : vector<256x256xf32>
    %40 = math.exp %39 : vector<256x256xf32>
    %cst_14 = arith.constant dense<0.000000e+00> : vector<256xf32>
    %41 = vector.multi_reduction <add>, %40, %cst_14 [1] : vector<256x256xf32> to vector<256xf32>
    %42 = vector.shape_cast %41 : vector<256xf32> to vector<256x1xf32>
    %43 = arith.addf %37, %42 : vector<256x1xf32>
    %44 = math.log %43 : vector<256x1xf32>
    %45 = arith.addf %34, %44 : vector<256x1xf32>
    %46 = vector.shape_cast %45 : vector<256x1xf32> to vector<1x256x1xf32>
    %cst_15 = arith.constant dense<0.000000e+00> : vector<1xf32>
    %47 = vector.multi_reduction <add>, %46, %cst_15 [1, 2] : vector<1x256x1xf32> to vector<1xf32>
    %48 = vector.shape_cast %47 : vector<1xf32> to vector<1x1x1xf32>
    %49 = vector.extract %48[0, 0, 0] : f32 from vector<1x1x1xf32>
    %50 = vector.broadcast %49 : f32 to vector<1x1x128xf32>
    %c0_16 = arith.constant 0 : index
    %c0_17 = arith.constant 0 : index
    %c0_18 = arith.constant 0 : index
    %51 = vector.load %arg4[%c0_16, %c0_17, %c0_18] : memref<1x1x128xf32, #tpu.memory_space<vmem>>, vector<1x1x128xf32>
    tpu.vector_store %arg4[%c0_16, %c0_17, %c0_18], %50 {strides = array<i32>} : memref<1x1x128xf32, #tpu.memory_space<vmem>>, vector<1x1x128xf32>,
    return
  }
  func.func @transform_0(%arg0: i32, %arg1: i32) -> (i32, i32, i32) {
    %c0_i32 = arith.constant 0 : i32
    %c0_i32_0 = arith.constant 0 : i32
    return %arg0, %c0_i32, %arg1 : i32, i32, i32
  }
  func.func @transform_1(%arg0: i32, %arg1: i32) -> (i32, i32, i32) {
    %c0_i32 = arith.constant 0 : i32
    %c0_i32_0 = arith.constant 0 : i32
    %c0_i32_1 = arith.constant 0 : i32
    return %arg0, %c0_i32, %c0_i32_0 : i32, i32, i32
  }
  func.func @transform_2(%arg0: i32, %arg1: i32) -> (i32, i32, i32) {
    %c0_i32 = arith.constant 0 : i32
    %c0_i32_0 = arith.constant 0 : i32
    return %arg0, %arg1, %c0_i32 : i32, i32, i32
  }
}

</mosaic_0001>

<bundles_post_ra>
// kernel: tpu_custom_call.1
= control target key start
LH: loop header
LB: loop body
LE: loop exit
PB: predicated region body
PF: predicated region fallthrough
CT: control target
= control target key end

     0   :  { %7 = vsyncpa [#allocation3], 0  ;;  %s3161_s0 = inlined_call_operand.hbm [shape: f32[2,4,256], index: 0, kind: input, shape index: {}]   ;;  %s3162_s1 = inlined_call_operand.hbm [shape: f32[2,4,256], index: 1, kind: input, shape index: {}]   ;;  %s3163_s2 = inlined_call_operand.hbm [shape: f32[2,1,128], index: 2, kind: output, shape index: {}]  }
   0x1   :  { %9 = vsyncpa [#allocation3 + $0x1], 0 }
   0x2   :  { %10 = vsyncpa [#allocation6], 0 }
   0x3   :  { %12 = vsyncpa [#allocation6 + $0x1], 0 }
   0x4   :  { %13 = vsyncpa [#allocation4], 0 }
   0x5   :  { %15 = vsyncpa [#allocation4 + $0x1], 0  ;;  %s2278_s9 = smov 0   ;;  %s2280_s10 = smov 0  }
   0x6   :  { %s2282_s11 = smov 0   ;;  %s2284_s12 = smov 0  }
   0x7   :  { %s2286_s13 = smov 0   ;;  %s2288_s14 = smov 0  }
   0x8 LB: > { %s1727_s15 = sadd.s32 4294967295, %s2257_s14   ;;  %s1728_s16 = sadd.s32 4294967294, %s2257_s14   ;;  %s2257_s14 = sphi %s2288_s14, %s21_s14   ;;  %s2253_s13 = sphi %s2286_s13, %s3231_s13   ;;  %s2249_s12 = sphi %s2284_s12, %s3230_s12   ;;  %s2245_s11 = sphi %s2282_s11, %s3229_s11   ;;  %s2241_s10 = sphi %s2280_s10, %s3228_s10   ;;  %s2237_s9 = sphi %s2278_s9, %s3227_s9  }
   0x9   : > { %s33_s17 = sadd.s32 1, %s2253_s13  ;;  %s42_s18 = sadd.s32 1, %s2245_s11 }
   0xa   : > { %p35_p0 = scmp.ge.s32.totalorder %s33_s17, 2  ;;  %p49_p1 = scmp.ne.s32.totalorder %s2245_s11, %s2241_s10 }
   0xb   : > { %p50_p2 = scmp.eq.s32.totalorder %s2257_s14, 0  ;;  %p55_p3 = scmp.ne.s32.totalorder %s2241_s10, %s2237_s9 }
   0xc   : > { %s3233_s17 = smov (%p35_p0, %s33_s17), 0  ;;  %p56_p5 = scmp.eq.s32.totalorder %s1727_s15, 0 }
   0xd   : > { %p2319_p4 = por %p50_p2, %p49_p1  ;;  %s37_s20 = ssub.s32 %s2253_s13, %s3233_s17 }
   0xe   : > { %p107_p6 = scmp.eq.s32.totalorder %s1727_s15, 1  ;;  %p40_p7 = scmp.eq.s32.totalorder %s37_s20, 0 }
   0xf   : > { %p2325_p8 = por %p56_p5, %p55_p3  ;;  %p113_p10 = scmp.eq.s32.totalorder %s1728_s16, 1 }
  0x10   : > { %p2329_p9 = por %p107_p6, %p49_p1  ;;  %p1800_p13 = scmp.lt.s32.totalorder %s2257_s14, 2 }
  0x11   : > { %s3185_s21 = scalar_select %p2325_p8, 1, 0 }
  0x12   : > { %s3186_s22 = scalar_select %p2329_p9, 1, 0 }
  0x13   : > { %s2334_s23 = scalar_select %p40_p7, %s2245_s11, %s42_s18  }
  0x14   : > { %p2336_p11 = por %p113_p10, %p55_p3  ;;  %s2343_s25 = sand.u32 1, %s2245_s11  }
  0x15   : > { %s1731_s26 = sshll.u32 %s2343_s25, 3  ;;  %s1777_s27 = sshll.u32 %s2253_s13, 7 }
  0x16   : > { %s3187_s24 = scalar_select %p2336_p11, 1, 0 }
  0x17   : > { %s2352_s30 = scalar_lea.hbm %s3161_s0, %s1777_s27  ;;  %s137_s3 = scalar_lea.vmem [#allocation2], %s1731_s26 }
  0x18   : > { %s147_s4 = sshll.u32 %s137_s3, 4  ;;  %p2360_p0 = pnand %p1800_p13, %p2319_p4  ;;  %s2356_s4 = int_to_ptr.vmem [resolvable:$true] %s147_s4 }
  0x19   : > { %s134_s6 = scalar_lea.sflag [#allocation3], %s2343_s25  ;;  %s2111_s7 = scalar_lea.hbm %s2352_s30, 128 }
  0x1a   : > { %p2112_p3 = scmp.ne.s32.totalorder %s2352_s30, %s2111_s7  ;;  %p2113_p5 = pneg %p2360_p0 }
  0x1b   : > { %s2116_s16 = scalar_lea.hbm %s3161_s0, 256  ;;  %p2117_p4 = scmp.lt.u32.totalorder %s2352_s30, %s3161_s0 }
  0x1c   : > { %p2114_p6 = pnand %p2113_p5, %p2112_p3  ;;  %p2118_p10 = scmp.lt.u32.totalorder %s2116_s16, %s2111_s7 }
  0x1d   : > { %p2120_p12 = scmp.lt.u32.totalorder %s2111_s7, %s2352_s30 }
  0x1e   : > { %p2115_p7 = pneg %p2114_p6  ;;  %p2119_p13 = por %p2118_p10, %p2117_p4 }
  0x20   : > { %p2121_p1 = por %p2120_p12, %p2119_p13 }
  0x22   : > { %p2122_p2 = pnand %p2121_p1, %p2115_p7 }
  0x24   : > { %2125 = shalt.err (!%p2122_p2)
}
  0x25   : > { %s2126_s20 = scalar_lea.vmem %s2356_s4, 128  ;;  %s2259_s28 = smov [#allocation2]  }
  0x26   : > { %p2127_p3 = scmp.ne.s32.totalorder %s2356_s4, %s2126_s20  ;;  %s2131_s29 = sshll.u32 %s2259_s28, 4  ;;  %s2132_s29 = int_to_ptr.vmem [resolvable:$false] %s2131_s29 }
  0x27   : > { %s2133_s3 = scalar_lea.vmem %s2132_s29, 256  ;;  %p2134_p9 = scmp.lt.s32.totalorder %s2356_s4, %s2132_s29 }
  0x28   : > { %p2129_p6 = pnand %p2127_p3, %p2113_p5  ;;  %p2135_p4 = scmp.lt.s32.totalorder %s2133_s3, %s2126_s20 }
  0x2a   : > { %p2130_p11 = pneg %p2129_p6  ;;  %p2136_p10 = por %p2135_p4, %p2134_p9 }
  0x2c   : > { %p2137_p12 = pnand %p2136_p10, %p2130_p11 }
  0x2e   : > { %2140 = shalt.err (!%p2137_p12)
}
  0x2f   : > { %1792 = dma.hbm_to_vmem [thread:$0]  (!%p2360_p0), %s2352_s30, 128, %s2356_s4, %s134_s6  }
  0x30   : > { %p3189_p1 = scmp.lt.s32.totalorder %s2257_s14, 3  ;;  %p3190_p2 = scmp.ge.s32.totalorder %s2257_s14, 1 }
  0x31   : > { %s2405_s16 = scalar_lea.hbm %s3162_s1, %s1777_s27  ;;  %s158_s18 = scalar_lea.vmem [#allocation5], %s1731_s26 }
  0x32   : > { %p2396_p7 = pnand %p3190_p2, %p3189_p1  ;;  %s166_s19 = sshll.u32 %s158_s18, 4  ;;  %s167_s19 = int_to_ptr.vmem [resolvable:$true] %s166_s19 }
  0x33   : > { %s155_s30 = scalar_lea.sflag [#allocation6], %s2343_s25  ;;  %s2141_s4 = scalar_lea.hbm %s2405_s16, 128 }
  0x34   : > { %s3191_s7 = scalar_select %p2396_p7, 1, 0 }
  0x35   : > { %p2142_p9 = scmp.ne.s32.totalorder %s2405_s16, %s2141_s4  ;;  %s2146_s27 = scalar_lea.hbm %s3162_s1, 256 }
  0x36   : > { %p2147_p3 = scmp.lt.u32.totalorder %s2405_s16, %s3162_s1  ;;  %p2148_p6 = scmp.lt.u32.totalorder %s2146_s27, %s2141_s4 }
  0x37   : > { %p2144_p11 = pnand %p2142_p9, %p2113_p5  ;;  %p2150_p10 = scmp.lt.u32.totalorder %s2141_s4, %s2405_s16 }
  0x38   : > { %p2149_p4 = por %p2148_p6, %p2147_p3 }
  0x39   : > { %p2145_p13 = pneg %p2144_p11 }
  0x3a   : > { %p2151_p12 = por %p2150_p10, %p2149_p4 }
  0x3c   : > { %p2152_p1 = pnand %p2151_p12, %p2145_p13 }
  0x3e   : > { %2155 = shalt.err (!%p2152_p1)
}
  0x3f   : > { %s2156_s25 = scalar_lea.vmem %s167_s19, 128  ;;  %s2260_s26 = smov [#allocation5]  }
  0x40   : > { %p2157_p2 = scmp.ne.s32.totalorder %s167_s19, %s2156_s25  ;;  %s2161_s3 = sshll.u32 %s2260_s26, 4  ;;  %s2162_s3 = int_to_ptr.vmem [resolvable:$false] %s2161_s3 }
  0x41   : > { %s2163_s8 = scalar_lea.vmem %s2162_s3, 256  ;;  %p2164_p8 = scmp.lt.s32.totalorder %s167_s19, %s2162_s3 }
  0x42   : > { %p2159_p9 = pnand %p2157_p2, %p2113_p5  ;;  %p2165_p7 = scmp.lt.s32.totalorder %s2163_s8, %s2156_s25 }
  0x44   : > { %p2160_p11 = pneg %p2159_p9  ;;  %p2166_p3 = por %p2165_p7, %p2164_p8 }
  0x46   : > { %p2167_p6 = pnand %p2166_p3, %p2160_p11 }
  0x48   : > { %2170 = shalt.err (!%p2167_p6)
}
  0x49   : > { %1795 = dma.hbm_to_vmem [thread:$0]  (!%p2360_p0), %s2405_s16, 128, %s167_s19, %s155_s30  }
  0x4a   : > { %p3192_p13 = scmp.ne.s32.totalorder %s3191_s7, 0 }
  0x4c   : > { %175 = sbr.rel (%p3192_p13) target bundleno = 1194 (0x4aa), region = 28 }
  0x53   : > { %s2432_s15 = sand.u32 1, %s2241_s10   ;;  %p3193_p5 = scmp.ne.s32.totalorder %s3185_s21, 0 }
  0x54   : > { %s1738_s18 = sshll.u32 %s2432_s15, 3  ;;  %s178_s4 = scalar_lea.sflag [#allocation3], %s2432_s15 }
  0x55   : > { %s181_s6 = scalar_lea.vmem [#allocation2], %s1738_s18 }
  0x56   : > { %2224 = dma.done.wait (%p3193_p5), %s178_s4, 128  }
  0x57   : > { %2226 = vsyncadd (%p3193_p5), %s178_s4, 4294967168  ;;  %s187_s5 = scalar_lea.sflag [#allocation6], %s2432_s15  ;;  %s190_s16 = scalar_lea.vmem [#allocation5], %s1738_s18 }
  0x58   : > { %2228 = dma.done.wait (%p3193_p5), %s187_s5, 128  }
  0x59   : > { %2230 = vsyncadd (%p3193_p5), %s187_s5, 4294967168  ;;  %v2261_v0 = vmov 0.0   ;;  %v216_v1 = vld [vmem:[%s181_s6] sm:$0xff]  ;;  %vm222_vm0 = vcmask 1043456   ;;  %v217_v2 = vld [vmem:[%s190_s16] sm:$0xff]  ;;  %vm341_vm1 = vcmask 31744  }
  0x5a   : > { %506 = vmatprep.mubr.f32.mxu0 %v2261_v0  ;;  %602 = vmatprep.mubr.f32.mxu1 %v2261_v0  ;;  %v218_v3 = vand.u32 2147483647, %v216_v1  ;;  %v246_v4 = vand.u32 2147483647, %v217_v2  ;;  %s214_s21 = scalar_lea.vmem [#allocation7], %s2432_s15  ;;  %s1774_s19 = sshll.u32 %s2249_s12, 4 }
  0x5b   : > { %s1626_s7 = sshll.u32 %s214_s21, 4  ;;  %s3114_s28 = scalar_lea.hbm %s3163_s2, %s1774_s19  ;;  %s3109_s7 = int_to_ptr.vmem [resolvable:$true] %s1626_s7 }
  0x5c   : > { %v220_v5 = vcombine.high %v218_v3, %v218_v3  ;;  %v223_v6 = vsel %vm222_vm0, %v218_v3, 0.0  ;;  %v248_v7 = vcombine.high %v246_v4, %v246_v4  ;;  %v250_v8 = vsel %vm222_vm0, %v246_v4, 0.0  ;;  %s1613_s29 = scalar_lea.sflag [#allocation4], %s2432_s15  ;;  %s2171_s25 = scalar_lea.vmem %s3109_s7, 16 }
  0x5d   : > { %v224_v9 = vrot.slane %v223_v6, 4  ;;  %v251_v10 = vrot.slane %v250_v8, 4  ;;  %p2172_p8 = scmp.ne.s32.totalorder %s3109_s7, %s2171_s25  ;;  %p3224_p0 = scmp.ne.s32.totalorder %s3186_s22, 0 }
  0x5e   : > { %v230_v11 = vsel %vm222_vm0, %v220_v5, 0.0  ;;  %v257_v12 = vsel %vm222_vm0, %v248_v7, 0.0  ;;  %s2262_s12 = smov [#allocation7]  }
  0x5f   : > { %v225_v13 = vadd.f32 %v224_v9, %v223_v6  ;;  %v231_v14 = vrot.slane %v230_v11, 4  ;;  %v252_v15 = vadd.f32 %v251_v10, %v250_v8  ;;  %v258_v16 = vrot.slane %v257_v12, 4  ;;  %p2173_p7 = pnand %p2172_p8, %p3224_p0  ;;  %s2175_s26 = sshll.u32 %s2262_s12, 4  ;;  %s2176_s26 = int_to_ptr.vmem [resolvable:$false] %s2175_s26 }
  0x60   : > { %s2177_s3 = scalar_lea.vmem %s2176_s26, 32  ;;  %p2178_p10 = scmp.lt.s32.totalorder %s3109_s7, %s2176_s26 }
  0x61   : > { %v226_v17 = vrot.slane %v225_v13, 2  ;;  %v232_v18 = vadd.f32 %v231_v14, %v230_v11  ;;  %v253_v19 = vrot.slane %v252_v15, 2  ;;  %v259_v20 = vadd.f32 %v258_v16, %v257_v12  ;;  %p2174_p4 = pneg %p2173_p7  ;;  %p2179_p12 = scmp.lt.s32.totalorder %s2177_s3, %s2171_s25 }
  0x63   : > { %v227_v21 = vadd.f32 %v226_v17, %v225_v13  ;;  %v233_v22 = vrot.slane %v232_v18, 2  ;;  %v254_v23 = vadd.f32 %v253_v19, %v252_v15  ;;  %v260_v24 = vrot.slane %v259_v20, 2  ;;  %p2180_p1 = por %p2179_p12, %p2178_p10 }
  0x64   : > { %v700_v17 = vlaneseq }
  0x65   : > { %v228_v25 = vrot.slane %v227_v21, 1  ;;  %v234_v26 = vadd.f32 %v233_v22, %v232_v18  ;;  %v255_v27 = vrot.slane %v254_v23, 1  ;;  %v261_v28 = vadd.f32 %v260_v24, %v259_v20  ;;  %p2181_p2 = pnand %p2180_p1, %p2174_p4 }
  0x66   : > { %v2517_v18 = vshrl.u32 %v700_v17, 7  ;;  %v2519_v19 = vand.u32 127, %v700_v17 }
  0x67   : > { %v229_v29 = vadd.f32 %v228_v25, %v227_v21  ;;  %v235_v30 = vrot.slane %v234_v26, 1  ;;  %v256_v31 = vadd.f32 %v255_v27, %v254_v23  ;;  %v262_v32 = vrot.slane %v261_v28, 1 }
  0x68   : > { %vm769_vm2 = vcmp.eq.s32.totalorder %v2517_v18, %v2519_v19  ;;  %v702_v20 = vadd.s32 8, %v2517_v18  ;;  %v703_v24 = vadd.s32 16, %v2517_v18  ;;  %v717_v17 = vadd.s32 128, %v2517_v18 }
  0x69   : > { %v236_v33 = vadd.f32 %v235_v30, %v234_v26  ;;  %v237_v34 = vmax.f32 %v229_v29, 1e-12  ;;  %v263_v35 = vadd.f32 %v262_v32, %v261_v28  ;;  %v264_v36 = vmax.f32 %v256_v31, 1e-12 }
  0x6a   : > { %vm771_vm3 = vcmp.eq.s32.totalorder %v702_v20, %v2519_v19  ;;  %vm773_vm4 = vcmp.eq.s32.totalorder %v703_v24, %v2519_v19  ;;  %v704_v28 = vadd.s32 24, %v2517_v18  ;;  %v705_v32 = vadd.s32 32, %v2517_v18 }
  0x6b   : > { %v238_v37 = vmax.f32 %v236_v33, 1e-12  ;;  %v265_v38 = vmax.f32 %v263_v35, 1e-12  ;;  %v2617_v20 = vadd.s32 128, %v2519_v19 }
  0x6c   : > { %vm775_vm5 = vcmp.eq.s32.totalorder %v704_v28, %v2519_v19  ;;  %vm777_vm6 = vcmp.eq.s32.totalorder %v705_v32, %v2519_v19 }
  0x6d   : > { %v241_v39 = vcombine.low %v237_v34, %v238_v37  ;;  %v268_v40 = vcombine.low %v264_v36, %v265_v38  ;;  %v706_v36 = vadd.s32 40, %v2517_v18 }
  0x6f   : > { %1851 = vrcp.f32 %v241_v39  ;;  %vm779_vm7 = vcmp.eq.s32.totalorder %v706_v36, %v2519_v19 }
  0x70   : > { %1853 = vrcp.f32 %v268_v40  ;;  %v707_v40 = vadd.s32 48, %v2517_v18 }
  0x72   : > { %vm781_vm8 = vcmp.eq.s32.totalorder %v707_v40, %v2519_v19 }
  0x79   : > { %v1852_v41 = vpop.eup %1851 }
  0x7a   : > { %v1854_v42 = vpop.eup %1853  ;;  %v244_v43 = vmul.f32 %v1852_v41, %v216_v1 }
  0x7b   : > { %v271_v44 = vmul.f32 %v1854_v42, %v217_v2 }
  0x7c   : > { %v245_v45 = vmul.f32 14.285714, %v244_v43 }
  0x7d   : > { %v340_v46 = vcombine.high %v271_v44, %v271_v44 }
  0x7e   : > { %275 = vxpose.xlu0.b32.start.end [1/1] (short) %v245_v45, 128  ;;  %v273_v47 = vcombine.high %v245_v45, %v245_v45 }
  0x7f   : > { %1740 = vmatprep.subr.msk.mxu0 %vm222_vm0, %v340_v46  ;;  %1779 = vmatprep.subr.msk.mxu1 %vm222_vm0, %v340_v46 }
  0x80   : > { %1741 = vmatpush1.msk.msra.mxu0 %vm222_vm0, %v271_v44  ;;  %1780 = vmatpush1.msk.msra.mxu1 %vm222_vm0, %v271_v44  ;;  %v708_v44 = vadd.s32 56, %v2517_v18 }
  0x82   : > { %vm783_vm9 = vcmp.eq.s32.totalorder %v708_v44, %v2519_v19 }
  0xbb   : > { %307 = vxpose.xlu0.b32.start.end [1/1] (short) %v273_v47, 128 }
  0xfe   : > { %v291_v48 = vpop.trf.xlu0 }
  0xff   : > { %1742 = vmatmul.mubr.msk.f32.vlgmr.msra.gmra.mrb[0].mxu0 %vm341_vm1, %v291_v48  ;;  %v709_v48 = vadd.s32 64, %v2517_v18 }
 0x100   : > { %512 = vmatprep.mubr.f32.mxu0 %v2261_v0 }
 0x101   : > { %vm785_vm10 = vcmp.eq.s32.totalorder %v709_v48, %v2519_v19 }
 0x102   : > { %v292_v49 = vpop.trf.xlu0 }
 0x103   : > { %1743 = vmatmul.mubr.msk.f32.gmra.mrb[2].mxu0 %vm341_vm1, %v292_v49 }
 0x104   : > { %518 = vmatprep.mubr.f32.mxu0 %v2261_v0 }
 0x106   : > { %v293_v50 = vpop.trf.xlu0 }
 0x107   : > { %1744 = vmatmul.mubr.msk.f32.gmra.mrb[4].mxu0 %vm341_vm1, %v293_v50 }
 0x108   : > { %524 = vmatprep.mubr.f32.mxu0 %v2261_v0 }
 0x10a   : > { %v294_v51 = vpop.trf.xlu0 }
 0x10b   : > { %1745 = vmatmul.mubr.msk.f32.gmra.mrb[6].mxu0 %vm341_vm1, %v294_v51 }
 0x10c   : > { %530 = vmatprep.mubr.f32.mxu0 %v2261_v0 }
 0x10e   : > { %v295_v52 = vpop.trf.xlu0 }
 0x10f   : > { %1746 = vmatmul.mubr.msk.f32.gmra.mrb[8].mxu0 %vm341_vm1, %v295_v52  ;;  %v710_v52 = vadd.s32 72, %v2517_v18 }
 0x110   : > { %536 = vmatprep.mubr.f32.mxu0 %v2261_v0 }
 0x111   : > { %vm787_vm11 = vcmp.eq.s32.totalorder %v710_v52, %v2519_v19 }
 0x112   : > { %v296_v53 = vpop.trf.xlu0 }
 0x113   : > { %1747 = vmatmul.mubr.msk.f32.gmra.mrb[10].mxu0 %vm341_vm1, %v296_v53 }
 0x114   : > { %542 = vmatprep.mubr.f32.mxu0 %v2261_v0 }
 0x116   : > { %v297_v54 = vpop.trf.xlu0 }
 0x117   : > { %1748 = vmatmul.mubr.msk.f32.gmra.mrb[12].mxu0 %vm341_vm1, %v297_v54 }
 0x118   : > { %548 = vmatprep.mubr.f32.mxu0 %v2261_v0 }
 0x11a   : > { %v298_v55 = vpop.trf.xlu0 }
 0x11b   : > { %1749 = vmatmul.mubr.msk.f32.gmra.mrb[14].mxu0 %vm341_vm1, %v298_v55 }
 0x11c   : > { %554 = vmatprep.mubr.f32.mxu0 %v2261_v0 }
 0x11e   : > { %v299_v56 = vpop.trf.xlu0 }
 0x11f   : > { %1750 = vmatmul.mubr.msk.f32.gmra.mrb[16].mxu0 %vm341_vm1, %v299_v56  ;;  %v711_v56 = vadd.s32 80, %v2517_v18 }
 0x120   : > { %560 = vmatprep.mubr.f32.mxu0 %v2261_v0 }
 0x121   : > { %vm789_vm12 = vcmp.eq.s32.totalorder %v711_v56, %v2519_v19 }
 0x122   : > { %v300_v57 = vpop.trf.xlu0 }
 0x123   : > { %1751 = vmatmul.mubr.msk.f32.gmra.mrb[18].mxu0 %vm341_vm1, %v300_v57 }
 0x124   : > { %566 = vmatprep.mubr.f32.mxu0 %v2261_v0 }
 0x126   : > { %v301_v58 = vpop.trf.xlu0 }
 0x127   : > { %1752 = vmatmul.mubr.msk.f32.gmra.mrb[20].mxu0 %vm341_vm1, %v301_v58 }
 0x128   : > { %572 = vmatprep.mubr.f32.mxu0 %v2261_v0 }
 0x12a   : > { %v302_v59 = vpop.trf.xlu0 }
 0x12b   : > { %1753 = vmatmul.mubr.msk.f32.gmra.mrb[22].mxu0 %vm341_vm1, %v302_v59 }
 0x12c   : > { %578 = vmatprep.mubr.f32.mxu0 %v2261_v0 }
 0x12e   : > { %v303_v60 = vpop.trf.xlu0 }
 0x12f   : > { %1754 = vmatmul.mubr.msk.f32.gmra.mrb[24].mxu0 %vm341_vm1, %v303_v60  ;;  %v712_v60 = vadd.s32 88, %v2517_v18 }
 0x130   : > { %584 = vmatprep.mubr.f32.mxu0 %v2261_v0 }
 0x131   : > { %vm791_vm13 = vcmp.eq.s32.totalorder %v712_v60, %v2519_v19 }
 0x132   : > { %v304_v61 = vpop.trf.xlu0 }
 0x133   : > { %1755 = vmatmul.mubr.msk.f32.gmra.mrb[26].mxu0 %vm341_vm1, %v304_v61 }
 0x134   : > { %590 = vmatprep.mubr.f32.mxu0 %v2261_v0 }
 0x136   : > { %v305_v62 = vpop.trf.xlu0 }
 0x137   : > { %1756 = vmatmul.mubr.msk.f32.gmra.mrb[28].mxu0 %vm341_vm1, %v305_v62 }
 0x138   : > { %596 = vmatprep.mubr.f32.mxu0 %v2261_v0 }
 0x13a   : > { %v306_v63 = vpop.trf.xlu0 }
 0x13b   : > { %1757 = vmatmul.mubr.msk.f32.gmra.mrb[30].mxu0 %vm341_vm1, %v306_v63 }
 0x13e   : > { %v323_v1 = vpop.trf.xlu0 }
 0x13f   : > { %1758 = vmatmul.mubr.msk.f32.vlgmr.msra.gmra.mrb[0].mxu1 %vm341_vm1, %v323_v1  ;;  %v713_v1 = vadd.s32 96, %v2517_v18 }
 0x140   : > { %608 = vmatprep.mubr.f32.mxu1 %v2261_v0 }
 0x141   : > { %vm793_vm14 = vcmp.eq.s32.totalorder %v713_v1, %v2519_v19 }
 0x142   : > { %v324_v2 = vpop.trf.xlu0 }
 0x143   : > { %1759 = vmatmul.mubr.msk.f32.gmra.mrb[2].mxu1 %vm341_vm1, %v324_v2 }
 0x144   : > { %614 = vmatprep.mubr.f32.mxu1 %v2261_v0 }
 0x146   : > { %v325_v3 = vpop.trf.xlu0 }
 0x147   : > { %1760 = vmatmul.mubr.msk.f32.gmra.mrb[4].mxu1 %vm341_vm1, %v325_v3 }
 0x148   : > { %620 = vmatprep.mubr.f32.mxu1 %v2261_v0 }
 0x14a   : > { %v326_v4 = vpop.trf.xlu0 }
 0x14b   : > { %1761 = vmatmul.mubr.msk.f32.gmra.mrb[6].mxu1 %vm341_vm1, %v326_v4 }
 0x14c   : > { %626 = vmatprep.mubr.f32.mxu1 %v2261_v0 }
 0x14e   : > { %v327_v5 = vpop.trf.xlu0 }
 0x14f   : > { %1762 = vmatmul.mubr.msk.f32.gmra.mrb[8].mxu1 %vm341_vm1, %v327_v5  ;;  %v714_v5 = vadd.s32 104, %v2517_v18 }
 0x150   : > { %632 = vmatprep.mubr.f32.mxu1 %v2261_v0 }
 0x151   : > { %vm795_vm15 = vcmp.eq.s32.totalorder %v714_v5, %v2519_v19 }
 0x152   : > { %v328_v6 = vpop.trf.xlu0 }
 0x153   : > { %1763 = vmatmul.mubr.msk.f32.gmra.mrb[10].mxu1 %vm341_vm1, %v328_v6 }
 0x154   : > { %638 = vmatprep.mubr.f32.mxu1 %v2261_v0 }
 0x156   : > { %v329_v7 = vpop.trf.xlu0 }
 0x157   : > { %1764 = vmatmul.mubr.msk.f32.gmra.mrb[12].mxu1 %vm341_vm1, %v329_v7 }
 0x158   : > { %644 = vmatprep.mubr.f32.mxu1 %v2261_v0 }
 0x15a   : > { %v330_v8 = vpop.trf.xlu0 }
 0x15b   : > { %1765 = vmatmul.mubr.msk.f32.gmra.mrb[14].mxu1 %vm341_vm1, %v330_v8 }
 0x15c   : > { %650 = vmatprep.mubr.f32.mxu1 %v2261_v0 }
 0x15e   : > { %v331_v9 = vpop.trf.xlu0 }
 0x15f   : > { %1766 = vmatmul.mubr.msk.f32.gmra.mrb[16].mxu1 %vm341_vm1, %v331_v9  ;;  %v715_v9 = vadd.s32 112, %v2517_v18 }
 0x160   : > { %656 = vmatprep.mubr.f32.mxu1 %v2261_v0 }
 0x161   : > { %vm797_vm0 = vcmp.eq.s32.totalorder %v715_v9, %v2519_v19  ;;  %v721_v9 = vadd.s32 160, %v2517_v18 }
 0x162   : > { %v332_v10 = vpop.trf.xlu0 }
 0x163   : > { %1767 = vmatmul.mubr.msk.f32.gmra.mrb[18].mxu1 %vm341_vm1, %v332_v10 }
 0x164   : > { %662 = vmatprep.mubr.f32.mxu1 %v2261_v0 }
 0x166   : > { %v333_v11 = vpop.trf.xlu0 }
 0x167   : > { %1768 = vmatmul.mubr.msk.f32.gmra.mrb[20].mxu1 %vm341_vm1, %v333_v11 }
 0x168   : > { %668 = vmatprep.mubr.f32.mxu1 %v2261_v0 }
 0x16a   : > { %v334_v12 = vpop.trf.xlu0 }
 0x16b   : > { %1769 = vmatmul.mubr.msk.f32.gmra.mrb[22].mxu1 %vm341_vm1, %v334_v12 }
 0x16c   : > { %674 = vmatprep.mubr.f32.mxu1 %v2261_v0 }
 0x16e   : > { %v335_v13 = vpop.trf.xlu0 }
 0x16f   : > { %1770 = vmatmul.mubr.msk.f32.gmra.mrb[24].mxu1 %vm341_vm1, %v335_v13  ;;  %v716_v13 = vadd.s32 120, %v2517_v18 }
 0x170   : > { %680 = vmatprep.mubr.f32.mxu1 %v2261_v0 }
 0x172   : > { %v336_v14 = vpop.trf.xlu0 }
 0x173   : > { %1771 = vmatmul.mubr.msk.f32.gmra.mrb[26].mxu1 %vm341_vm1, %v336_v14 }
 0x174   : > { %686 = vmatprep.mubr.f32.mxu1 %v2261_v0 }
 0x176   : > { %v337_v15 = vpop.trf.xlu0 }
 0x177   : > { %1772 = vmatmul.mubr.msk.f32.gmra.mrb[28].mxu1 %vm341_vm1, %v337_v15 }
 0x178   : > { %692 = vmatprep.mubr.f32.mxu1 %v2261_v0 }
 0x17a   : > { %v338_v16 = vpop.trf.xlu0 }
 0x17b   : > { %1773 = vmatmul.mubr.msk.f32.gmra.mrb[30].mxu1 %vm341_vm1, %v338_v16  ;;  %vm799_vm1 = vcmp.eq.s32.totalorder %v716_v13, %v2519_v19 }
 0x1d2   : > { %v508_v21 = vpop.f32.mrb[0].mxu0 }
 0x1d3   : > { %v2524_v22 = vsel %vm769_vm2, -142.85715, %v508_v21  ;;  %v2526_v23 = vpop.f32.mrb[1].mxu0  ;;  %vm802_vm2 = vcmp.eq.s32.totalorder %v717_v17, %v2617_v20 }
 0x1d4   : > { %v897_v0 = vmax.f32 %v2524_v22, %v2526_v23 }
 0x1d6   : > { %898 = vmax.xlane.f32.xlu1 %v897_v0  ;;  %v514_v25 = vpop.f32.mrb[2].mxu0 }
 0x1d7   : > { %v2532_v26 = vsel %vm771_vm3, -142.85715, %v514_v25  ;;  %v2534_v27 = vpop.f32.mrb[3].mxu0  ;;  %v718_v25 = vadd.s32 136, %v2517_v18 }
 0x1d9   : > { %vm804_vm3 = vcmp.eq.s32.totalorder %v718_v25, %v2617_v20 }
 0x1da   : > { %v520_v29 = vpop.f32.mrb[4].mxu0 }
 0x1db   : > { %v2538_v30 = vsel %vm773_vm4, -142.85715, %v520_v29  ;;  %v2540_v31 = vpop.f32.mrb[5].mxu0 }
 0x1de   : > { %v526_v33 = vpop.f32.mrb[6].mxu0 }
 0x1df   : > { %v2544_v34 = vsel %vm775_vm5, -142.85715, %v526_v33  ;;  %v2546_v35 = vpop.f32.mrb[7].mxu0 }
 0x1e2   : > { %v532_v37 = vpop.f32.mrb[8].mxu0 }
 0x1e3   : > { %v2550_v38 = vsel %vm777_vm6, -142.85715, %v532_v37  ;;  %v2552_v39 = vpop.f32.mrb[9].mxu0  ;;  %v719_v37 = vadd.s32 144, %v2517_v18  ;;  %vm810_vm6 = vcmp.eq.s32.totalorder %v721_v9, %v2617_v20 }
 0x1e5   : > { %vm806_vm4 = vcmp.eq.s32.totalorder %v719_v37, %v2617_v20 }
 0x1e6   : > { %v538_v41 = vpop.f32.mrb[10].mxu0 }
 0x1e7   : > { %v2556_v42 = vsel %vm779_vm7, -142.85715, %v538_v41  ;;  %v2558_v43 = vpop.f32.mrb[11].mxu0  ;;  %v900_v41 = vmax.f32 %v2532_v26, %v2534_v27 }
 0x1ea   : > { %v544_v45 = vpop.f32.mrb[12].mxu0 }
 0x1eb   : > { %v2562_v46 = vsel %vm781_vm8, -142.85715, %v544_v45  ;;  %v2564_v47 = vpop.f32.mrb[13].mxu0 }
 0x1ee   : > { %v550_v49 = vpop.f32.mrb[14].mxu0 }
 0x1ef   : > { %v2568_v50 = vsel %vm783_vm9, -142.85715, %v550_v49  ;;  %v2570_v51 = vpop.f32.mrb[15].mxu0  ;;  %v903_v49 = vmax.f32 %v2538_v30, %v2540_v31 }
 0x1f2   : > { %v556_v53 = vpop.f32.mrb[16].mxu0 }
 0x1f3   : > { %v2574_v54 = vsel %vm785_vm10, -142.85715, %v556_v53  ;;  %v2576_v55 = vpop.f32.mrb[17].mxu0 }
 0x1f6   : > { %v562_v57 = vpop.f32.mrb[18].mxu0 }
 0x1f7   : > { %v2580_v58 = vsel %vm787_vm11, -142.85715, %v562_v57  ;;  %v2582_v59 = vpop.f32.mrb[19].mxu0  ;;  %v720_v57 = vadd.s32 152, %v2517_v18 }
 0x1f9   : > { %vm808_vm5 = vcmp.eq.s32.totalorder %v720_v57, %v2617_v20  ;;  %v723_v57 = vadd.s32 176, %v2517_v18 }
 0x1fa   : > { %v568_v61 = vpop.f32.mrb[20].mxu0 }
 0x1fb   : > { %v2586_v62 = vsel %vm789_vm12, -142.85715, %v568_v61  ;;  %v2588_v63 = vpop.f32.mrb[21].mxu0  ;;  %vm814_vm8 = vcmp.eq.s32.totalorder %v723_v57, %v2617_v20 }
 0x1fe   : > { %v574_v2 = vpop.f32.mrb[22].mxu0 }
 0x1ff   : > { %v2592_v3 = vsel %vm791_vm13, -142.85715, %v574_v2  ;;  %v2594_v4 = vpop.f32.mrb[23].mxu0  ;;  %v906_v2 = vmax.f32 %v2544_v34, %v2546_v35 }
 0x202   : > { %v580_v6 = vpop.f32.mrb[24].mxu0 }
 0x203   : > { %v2598_v7 = vsel %vm793_vm14, -142.85715, %v580_v6  ;;  %v2600_v8 = vpop.f32.mrb[25].mxu0 }
 0x206   : > { %v586_v10 = vpop.f32.mrb[26].mxu0 }
 0x207   : > { %v2604_v11 = vsel %vm795_vm15, -142.85715, %v586_v10  ;;  %v2606_v12 = vpop.f32.mrb[27].mxu0 }
 0x20a   : > { %v592_v14 = vpop.f32.mrb[28].mxu0 }
 0x20b   : > { %v2610_v15 = vsel %vm797_vm0, -142.85715, %v592_v14  ;;  %v2612_v16 = vpop.f32.mrb[29].mxu0 }
 0x20e   : > { %v598_v21 = vpop.f32.mrb[30].mxu0 }
 0x20f   : > { %v2619_v0 = vsel %vm799_vm1, -142.85715, %v598_v21  ;;  %v2621_v24 = vpop.f32.mrb[31].mxu0  ;;  %v909_v21 = vmax.f32 %v2550_v38, %v2552_v39 }
 0x210   : > { %3194 = vst [vmem:[#allocation11_spill] sm:$0xff] %v2621_v24 }
 0x212   : > { %v2625_v28 = vpop.f32.mrb[0].mxu1 }
 0x213   : > { %v606_v29 = vpop.f32.mrb[1].mxu1 }
 0x214   : > { %v2627_v32 = vsel %vm802_vm2, -142.85715, %v606_v29  ;;  %vm1537_vm2 = vcmask 7168  }
 0x215   : > { %v945_v33 = vmax.f32 %v2625_v28, %v2627_v32 }
 0x216   : > { %v2632_v19 = vpop.f32.mrb[2].mxu1 }
 0x217   : > { %946 = vmax.xlane.f32.xlu1 %v945_v33  ;;  %v612_v36 = vpop.f32.mrb[3].mxu1  ;;  %v722_v33 = vadd.s32 168, %v2517_v18 }
 0x218   : > { %v2635_v40 = vsel %vm804_vm3, -142.85715, %v612_v36 }
 0x219   : > { %v948_v44 = vmax.f32 %v2632_v19, %v2635_v40  ;;  %vm812_vm7 = vcmp.eq.s32.totalorder %v722_v33, %v2617_v20  ;;  %v724_v33 = vadd.s32 184, %v2517_v18 }
 0x21a   : > { %v2641_v45 = vpop.f32.mrb[4].mxu1 }
 0x21b   : > { %901 = vmax.xlane.f32.xlu1 %v900_v41  ;;  %949 = vmax.xlane.f32.xlu0 %v948_v44  ;;  %v618_v48 = vpop.f32.mrb[5].mxu1  ;;  %vm816_vm9 = vcmp.eq.s32.totalorder %v724_v33, %v2617_v20  ;;  %v921_v33 = vmax.f32 %v2574_v54, %v2576_v55 }
 0x21c   : > { %v2646_v52 = vsel %vm806_vm4, -142.85715, %v618_v48  ;;  %v912_v48 = vmax.f32 %v2556_v42, %v2558_v43 }
 0x21d   : > { %v951_v60 = vmax.f32 %v2641_v45, %v2646_v52 }
 0x21e   : > { %v2648_v53 = vpop.f32.mrb[6].mxu1 }
 0x21f   : > { %3195 = vst [vmem:[#allocation12_spill] sm:$0xff] %v2648_v53  ;;  %904 = vmax.xlane.f32.xlu1 %v903_v49  ;;  %v624_v56 = vpop.f32.mrb[7].mxu1 }
 0x220   : > { %v2658_v5 = vsel %vm808_vm5, -142.85715, %v624_v56 }
 0x221   : > { %3197 = vst [vmem:[#allocation14_spill] sm:$0xff] %v2658_v5  ;;  %v954_v13 = vmax.f32 %v2648_v53, %v2658_v5 }
 0x222   : > { %v2653_v61 = vpop.f32.mrb[8].mxu1 }
 0x223   : > { %3196 = vst [vmem:[#allocation13_spill] sm:$0xff] %v2653_v61  ;;  %952 = vmax.xlane.f32.xlu1 %v951_v60  ;;  %v630_v1 = vpop.f32.mrb[9].mxu1 }
 0x224   : > { %v2670_v25 = vsel %vm810_vm6, -142.85715, %v630_v1 }
 0x225   : > { %3200 = vst [vmem:[#allocation17_spill] sm:$0xff] %v2670_v25  ;;  %v957_v37 = vmax.f32 %v2653_v61, %v2670_v25 }
 0x226   : > { %v2660_v6 = vpop.f32.mrb[10].mxu1 }
 0x227   : > { %3198 = vst [vmem:[#allocation15_spill] sm:$0xff] %v2660_v6  ;;  %907 = vmax.xlane.f32.xlu1 %v906_v2  ;;  %v636_v10 = vpop.f32.mrb[11].mxu1 }
 0x228   : > { %v2682_v49 = vsel %vm812_vm7, -142.85715, %v636_v10 }
 0x229   : > { %3202 = vst [vmem:[#allocation19_spill] sm:$0xff] %v2682_v49  ;;  %v960_v1 = vmax.f32 %v2660_v6, %v2682_v49 }
 0x22a   : > { %v2665_v14 = vpop.f32.mrb[12].mxu1 }
 0x22b   : > { %3199 = vst [vmem:[#allocation16_spill] sm:$0xff] %v2665_v14  ;;  %955 = vmax.xlane.f32.xlu1 %v954_v13  ;;  %v642_v17 = vpop.f32.mrb[13].mxu1  ;;  %v915_v13 = vmax.f32 %v2562_v46, %v2564_v47 }
 0x22c   : > { %v2694_v10 = vsel %vm814_vm8, -142.85715, %v642_v17 }
 0x22d   : > { %3203 = vst [vmem:[#allocation20_spill] sm:$0xff] %v2694_v10 }
 0x22e   : > { %v2672_v29 = vpop.f32.mrb[14].mxu1 }
 0x22f   : > { %3201 = vst [vmem:[#allocation18_spill] sm:$0xff] %v2672_v29  ;;  %910 = vmax.xlane.f32.xlu1 %v909_v21  ;;  %v648_v36 = vpop.f32.mrb[15].mxu1 }
 0x230   : > { %v2706_v17 = vsel %vm816_vm9, -142.85715, %v648_v36  ;;  %v924_v36 = vmax.f32 %v2580_v58, %v2582_v59 }
 0x231   : > { %3204 = vst [vmem:[#allocation21_spill] sm:$0xff] %v2706_v17  ;;  %v966_v25 = vmax.f32 %v2672_v29, %v2706_v17  ;;  %v930_v17 = vmax.f32 %v2592_v3, %v2594_v4  ;;  %v725_v29 = vadd.s32 192, %v2517_v18 }
 0x232   : > { %v2677_v41 = vpop.f32.mrb[16].mxu1 }
 0x233   : > { %958 = vmax.xlane.f32.xlu1 %v957_v37  ;;  %v654_v44 = vpop.f32.mrb[17].mxu1  ;;  %vm818_vm10 = vcmp.eq.s32.totalorder %v725_v29, %v2617_v20  ;;  %v728_v29 = vadd.s32 216, %v2517_v18 }
 0x234   : > { %v2735_v5 = vsel %vm818_vm10, -142.85715, %v654_v44 }
 0x235   : > { %vm824_vm13 = vcmp.eq.s32.totalorder %v728_v29, %v2617_v20 }
 0x236   : > { %v2684_v56 = vpop.f32.mrb[18].mxu1 }
 0x237   : > { %913 = vmax.xlane.f32.xlu1 %v912_v48  ;;  %v660_v60 = vpop.f32.mrb[19].mxu1  ;;  %v963_v48 = vmax.f32 %v2665_v14, %v2694_v10 }
 0x23a   : > { %v2689_v2 = vpop.f32.mrb[20].mxu1 }
 0x23b   : > { %961 = vmax.xlane.f32.xlu1 %v960_v1  ;;  %v666_v9 = vpop.f32.mrb[21].mxu1  ;;  %v918_v1 = vmax.f32 %v2568_v50, %v2570_v51 }
 0x23e   : > { %v2696_v21 = vpop.f32.mrb[22].mxu1 }
 0x23f   : > { %916 = vmax.xlane.f32.xlu1 %v915_v13  ;;  %v672_v37 = vpop.f32.mrb[23].mxu1 }
 0x242   : > { %v2701_v49 = vpop.f32.mrb[24].mxu1 }
 0x243   : > { %964 = vmax.xlane.f32.xlu1 %v963_v48  ;;  %v678_v57 = vpop.f32.mrb[25].mxu1 }
 0x246   : > { %v2708_v6 = vpop.f32.mrb[26].mxu1 }
 0x247   : > { %919 = vmax.xlane.f32.xlu1 %v918_v1  ;;  %v684_v13 = vpop.f32.mrb[27].mxu1  ;;  %v927_v1 = vmax.f32 %v2586_v62, %v2588_v63 }
 0x24a   : > { %v2712_v61 = vpop.f32.mrb[28].mxu1 }
 0x24b   : > { %967 = vmax.xlane.f32.xlu1 %v966_v25  ;;  %v690_v10 = vpop.f32.mrb[29].mxu1  ;;  %v933_v25 = vmax.f32 %v2598_v7, %v2600_v8 }
 0x24e   : > { %v2716_v48 = vpop.f32.mrb[30].mxu1 }
 0x24f   : > { %922 = vmax.xlane.f32.xlu1 %v921_v33  ;;  %v696_v14 = vpop.f32.mrb[31].mxu1  ;;  %v936_v33 = vmax.f32 %v2604_v11, %v2606_v12 }
 0x253   : > { %925 = vmax.xlane.f32.xlu1 %v924_v36  ;;  %v939_v36 = vmax.f32 %v2610_v15, %v2612_v16 }
 0x257   : > { %928 = vmax.xlane.f32.xlu1 %v927_v1  ;;  %v726_v1 = vadd.s32 200, %v2517_v18 }
 0x259   : > { %vm820_vm11 = vcmp.eq.s32.totalorder %v726_v1, %v2617_v20  ;;  %v729_v1 = vadd.s32 224, %v2517_v18 }
 0x25a   : > { %v2741_v53 = vsel %vm820_vm11, -142.85715, %v660_v60 }
 0x25b   : > { %931 = vmax.xlane.f32.xlu1 %v930_v17  ;;  %v942_v17 = vmax.f32 %v2619_v0, %v2621_v24  ;;  %3205 = vst [vmem:[#allocation22_spill] sm:$0xff] %v2741_v53  ;;  %v972_v44 = vmax.f32 %v2684_v56, %v2741_v53  ;;  %vm826_vm14 = vcmp.eq.s32.totalorder %v729_v1, %v2617_v20 }
 0x25f   : > { %934 = vmax.xlane.f32.xlu1 %v933_v25  ;;  %v727_v25 = vadd.s32 208, %v2517_v18 }
 0x261   : > { %vm822_vm12 = vcmp.eq.s32.totalorder %v727_v25, %v2617_v20 }
 0x262   : > { %v2747_v24 = vsel %vm822_vm12, -142.85715, %v666_v9  ;;  %v730_v9 = vadd.s32 232, %v2517_v18 }
 0x263   : > { %937 = vmax.xlane.f32.xlu1 %v936_v33  ;;  %v969_v33 = vmax.f32 %v2677_v41, %v2735_v5  ;;  %v975_v60 = vmax.f32 %v2689_v2, %v2747_v24 }
 0x264   : > { %vm828_vm15 = vcmp.eq.s32.totalorder %v730_v9, %v2617_v20 }
 0x267   : > { %940 = vmax.xlane.f32.xlu1 %v939_v36  ;;  %v899_v36 = vpop.xlane.xlu1 %898 }
 0x26b   : > { %943 = vmax.xlane.f32.xlu1 %v942_v17  ;;  %v2749_v17 = vmax.f32 %v899_v36, 0.0 }
 0x26d   : > { %3206 = vst [vmem:[#allocation23_spill] sm:$0xff] %v2749_v17  ;;  %v1121_v25 = vsub.f32 %v2524_v22, %v2749_v17  ;;  %v1122_v36 = vsub.f32 %v2526_v23, %v2749_v17  ;;  %v732_v23 = vadd.s32 248, %v2517_v18 }
 0x26f   : > { %970 = vmax.xlane.f32.xlu1 %v969_v33  ;;  %v2755_v33 = vsel %vm824_vm13, -142.85715, %v672_v37  ;;  %v1185_v53 = vmul.f32 1.442695, %v1121_v25  ;;  %v731_v37 = vadd.s32 240, %v2517_v18  ;;  %vm832_vm1 = vcmp.eq.s32.totalorder %v732_v23, %v2617_v20 }
 0x270   : > { %v978_v29 = vmax.f32 %v2696_v21, %v2755_v33  ;;  %v1187_v22 = vmul.f32 1.442695, %v1122_v36 }
 0x271   : > { %1855 = vpow2.f32 %v1185_v53  ;;  %vm830_vm0 = vcmp.eq.s32.totalorder %v731_v37, %v2617_v20 }
 0x272   : > { %1857 = vpow2.f32 %v1187_v22  ;;  %v2777_v25 = vsel %vm830_vm0, -142.85715, %v690_v10 }
 0x273   : > { %973 = vmax.xlane.f32.xlu1 %v972_v44  ;;  %v2765_v44 = vsel %vm826_vm14, -142.85715, %v678_v57  ;;  %v987_v9 = vmax.f32 %v2712_v61, %v2777_v25 }
 0x274   : > { %v981_v1 = vmax.f32 %v2701_v49, %v2765_v44 }
 0x277   : > { %976 = vmax.xlane.f32.xlu1 %v975_v60  ;;  %v2771_v60 = vsel %vm828_vm15, -142.85715, %v684_v13  ;;  %v2782_v13 = vsel %vm832_vm1, -142.85715, %v696_v14 }
 0x278   : > { %v984_v57 = vmax.f32 %v2708_v6, %v2771_v60  ;;  %v990_v36 = vmax.f32 %v2716_v48, %v2782_v13 }
 0x27b   : > { %979 = vmax.xlane.f32.xlu1 %v978_v29  ;;  %v1856_v53 = vpop.eup %1855 }
 0x27c   : > { %v1858_v18 = vpop.eup %1857 }
 0x27d   : > { %v1313_v29 = vadd.f32 %v1858_v18, %v1856_v53 }
 0x27f   : > { %982 = vmax.xlane.f32.xlu1 %v981_v1 }
 0x283   : > { %985 = vmax.xlane.f32.xlu1 %v984_v57 }
 0x287   : > { %988 = vmax.xlane.f32.xlu1 %v987_v9 }
 0x28b   : > { %991 = vmax.xlane.f32.xlu1 %v990_v36 }
 0x28f   : > { %1314 = vadd.xlane.f32.xlu1 %v1313_v29 }
 0x2a4   : > { %v2786_v37 = vpop.xlane.xlu1 %946 }
 0x2a8   : > { %v902_v10 = vpop.xlane.xlu1 %901 }
 0x2a9   : > { %v2788_v22 = vmax.f32 %v902_v10, 0.0 }
 0x2ab   : > { %v1123_v20 = vsub.f32 %v2532_v26, %v2788_v22  ;;  %v1124_v14 = vsub.f32 %v2534_v27, %v2788_v22 }
 0x2ac   : > { %v905_v1 = vpop.xlane.xlu1 %904 }
 0x2ad   : > { %v1189_v23 = vmul.f32 1.442695, %v1123_v20  ;;  %v1191_v57 = vmul.f32 1.442695, %v1124_v14  ;;  %v2794_v9 = vmax.f32 %v905_v1, 0.0 }
 0x2af   : > { %3207 = vst [vmem:[#allocation24_spill] sm:$0xff] %v2794_v9  ;;  %1859 = vpow2.f32 %v1189_v23  ;;  %v1125_v53 = vsub.f32 %v2538_v30, %v2794_v9  ;;  %v1126_v36 = vsub.f32 %v2540_v31, %v2794_v9 }
 0x2b0   : > { %v2796_v17 = vpop.xlane.xlu1 %952  ;;  %1861 = vpow2.f32 %v1191_v57 }
 0x2b1   : > { %v1193_v18 = vmul.f32 1.442695, %v1125_v53  ;;  %v1195_v26 = vmul.f32 1.442695, %v1126_v36 }
 0x2b3   : > { %1863 = vpow2.f32 %v1193_v18 }
 0x2b4   : > { %v908_v29 = vpop.xlane.xlu1 %907  ;;  %1865 = vpow2.f32 %v1195_v26 }
 0x2b5   : > { %v2802_v10 = vmax.f32 %v908_v29, 0.0 }
 0x2b7   : > { %3208 = vst [vmem:[#allocation25_spill] sm:$0xff] %v2802_v10  ;;  %v1127_v27 = vsub.f32 %v2544_v34, %v2802_v10  ;;  %v1128_v20 = vsub.f32 %v2546_v35, %v2802_v10 }
 0x2b8   : > { %v2808_v14 = vpop.xlane.xlu1 %955 }
 0x2b9   : > { %v1197_v1 = vmul.f32 1.442695, %v1127_v27  ;;  %v1199_v30 = vmul.f32 1.442695, %v1128_v20  ;;  %v1860_v23 = vpop.eup %1859 }
 0x2ba   : > { %v1862_v57 = vpop.eup %1861 }
 0x2bb   : > { %1867 = vpow2.f32 %v1197_v1  ;;  %v1316_v36 = vadd.f32 %v1862_v57, %v1860_v23 }
 0x2bc   : > { %v911_v31 = vpop.xlane.xlu1 %910  ;;  %1869 = vpow2.f32 %v1199_v30 }
 0x2bd   : > { %v2810_v53 = vmax.f32 %v911_v31, 0.0  ;;  %1317 = vadd.xlane.f32.xlu1 %v1316_v36  ;;  %v1864_v26 = vpop.eup %1863 }
 0x2be   : > { %v1866_v29 = vpop.eup %1865 }
 0x2bf   : > { %v1129_v18 = vsub.f32 %v2550_v38, %v2810_v53  ;;  %v1130_v34 = vsub.f32 %v2552_v39, %v2810_v53  ;;  %v1319_v10 = vadd.f32 %v1866_v29, %v1864_v26 }
 0x2c0   : > { %v2816_v35 = vpop.xlane.xlu1 %958 }
 0x2c1   : > { %v1201_v27 = vmul.f32 1.442695, %v1129_v18  ;;  %v1203_v20 = vmul.f32 1.442695, %v1130_v34  ;;  %1320 = vadd.xlane.f32.xlu1 %v1319_v10 }
 0x2c3   : > { %1871 = vpow2.f32 %v1201_v27 }
 0x2c4   : > { %v914_v9 = vpop.xlane.xlu1 %913  ;;  %1873 = vpow2.f32 %v1203_v20 }
 0x2c5   : > { %v2818_v1 = vmax.f32 %v914_v9, 0.0  ;;  %v1868_v30 = vpop.eup %1867 }
 0x2c6   : > { %v1870_v23 = vpop.eup %1869 }
 0x2c7   : > { %v1131_v38 = vsub.f32 %v2556_v42, %v2818_v1  ;;  %v1132_v39 = vsub.f32 %v2558_v43, %v2818_v1  ;;  %v1322_v31 = vadd.f32 %v1870_v23, %v1868_v30 }
 0x2c8   : > { %v2824_v57 = vpop.xlane.xlu1 %961 }
 0x2c9   : > { %v1205_v36 = vmul.f32 1.442695, %v1131_v38  ;;  %v1207_v18 = vmul.f32 1.442695, %v1132_v39  ;;  %1323 = vadd.xlane.f32.xlu1 %v1322_v31 }
 0x2cb   : > { %1875 = vpow2.f32 %v1205_v36 }
 0x2cc   : > { %v917_v34 = vpop.xlane.xlu1 %916  ;;  %1877 = vpow2.f32 %v1207_v18 }
 0x2cd   : > { %v2826_v10 = vmax.f32 %v917_v34, 0.0  ;;  %v1872_v9 = vpop.eup %1871 }
 0x2ce   : > { %v1874_v26 = vpop.eup %1873 }
 0x2cf   : > { %v1133_v29 = vsub.f32 %v2562_v46, %v2826_v10  ;;  %v1134_v42 = vsub.f32 %v2564_v47, %v2826_v10  ;;  %v1325_v27 = vadd.f32 %v1874_v26, %v1872_v9 }
 0x2d0   : > { %v2832_v43 = vpop.xlane.xlu1 %964 }
 0x2d1   : > { %v1209_v20 = vmul.f32 1.442695, %v1133_v29  ;;  %v1211_v30 = vmul.f32 1.442695, %v1134_v42  ;;  %1326 = vadd.xlane.f32.xlu1 %v1325_v27 }
 0x2d3   : > { %1879 = vpow2.f32 %v1209_v20 }
 0x2d4   : > { %v920_v23 = vpop.xlane.xlu1 %919  ;;  %1881 = vpow2.f32 %v1211_v30 }
 0x2d5   : > { %v2834_v38 = vmax.f32 %v920_v23, 0.0  ;;  %v1876_v39 = vpop.eup %1875 }
 0x2d6   : > { %v1878_v31 = vpop.eup %1877 }
 0x2d7   : > { %v1135_v36 = vsub.f32 %v2568_v50, %v2834_v38  ;;  %v1136_v46 = vsub.f32 %v2570_v51, %v2834_v38  ;;  %v1328_v18 = vadd.f32 %v1878_v31, %v1876_v39 }
 0x2d8   : > { %v2840_v47 = vpop.xlane.xlu1 %967 }
 0x2d9   : > { %v1213_v34 = vmul.f32 1.442695, %v1135_v36  ;;  %v1215_v9 = vmul.f32 1.442695, %v1136_v46  ;;  %1329 = vadd.xlane.f32.xlu1 %v1328_v18 }
 0x2db   : > { %1883 = vpow2.f32 %v1213_v34 }
 0x2dc   : > { %v923_v26 = vpop.xlane.xlu1 %922  ;;  %1885 = vpow2.f32 %v1215_v9 }
 0x2dd   : > { %v2842_v29 = vmax.f32 %v923_v26, 0.0  ;;  %v1880_v42 = vpop.eup %1879 }
 0x2de   : > { %v1882_v27 = vpop.eup %1881 }
 0x2df   : > { %v1137_v20 = vsub.f32 %v2574_v54, %v2842_v29  ;;  %v1138_v50 = vsub.f32 %v2576_v55, %v2842_v29  ;;  %v1331_v23 = vadd.f32 %v1882_v27, %v1880_v42  ;;  %v2857_v42 = vmax.f32 %v2786_v37, 0.0 }
 0x2e0   : > { %v926_v51 = vpop.xlane.xlu1 %925 }
 0x2e1   : > { %v2848_v30 = vmax.f32 %v926_v51, 0.0  ;;  %v1217_v39 = vmul.f32 1.442695, %v1137_v20  ;;  %v1219_v31 = vmul.f32 1.442695, %v1138_v50  ;;  %1332 = vadd.xlane.f32.xlu1 %v1331_v23 }
 0x2e3   : > { %v1139_v36 = vsub.f32 %v2580_v58, %v2848_v30  ;;  %v1140_v46 = vsub.f32 %v2582_v59, %v2848_v30  ;;  %1887 = vpow2.f32 %v1217_v39 }
 0x2e4   : > { %v929_v18 = vpop.xlane.xlu1 %928  ;;  %1889 = vpow2.f32 %v1219_v31  ;;  %v950_v31 = vpop.xlane.xlu0 %949 }
 0x2e5   : > { %v1221_v34 = vmul.f32 1.442695, %v1139_v36  ;;  %v1223_v54 = vmul.f32 1.442695, %v1140_v46  ;;  %v2854_v9 = vmax.f32 %v929_v18, 0.0  ;;  %v1884_v55 = vpop.eup %1883 }
 0x2e6   : > { %v1886_v26 = vpop.eup %1885 }
 0x2e7   : > { %1891 = vpow2.f32 %v1221_v34  ;;  %v1141_v58 = vsub.f32 %v2586_v62, %v2854_v9  ;;  %v1142_v59 = vsub.f32 %v2588_v63, %v2854_v9  ;;  %v1334_v50 = vadd.f32 %v1886_v26, %v1884_v55 }
 0x2e8   : > { %v932_v27 = vpop.xlane.xlu1 %931  ;;  %1893 = vpow2.f32 %v1223_v54  ;;  %v1153_v62 = vsub.f32 %v2625_v28, %v2857_v42  ;;  %v1154_v54 = vsub.f32 %v2627_v32, %v2857_v42 }
 0x2e9   : > { %v2863_v20 = vmax.f32 %v932_v27, 0.0  ;;  %v1225_v51 = vmul.f32 1.442695, %v1141_v58  ;;  %v1227_v23 = vmul.f32 1.442695, %v1142_v59  ;;  %1335 = vadd.xlane.f32.xlu1 %v1334_v50 }
 0x2eb   : > { %v1143_v39 = vsub.f32 %v2592_v3, %v2863_v20  ;;  %v1144_v37 = vsub.f32 %v2594_v4, %v2863_v20  ;;  %1895 = vpow2.f32 %v1225_v51  ;;  %v2875_v3 = vmax.f32 %v950_v31, 0.0 }
 0x2ec   : > { %v935_v36 = vpop.xlane.xlu1 %934  ;;  %1897 = vpow2.f32 %v1227_v23  ;;  %v1249_v4 = vmul.f32 1.442695, %v1153_v62 }
 0x2ed   : > { %v1229_v63 = vmul.f32 1.442695, %v1143_v39  ;;  %v1231_v46 = vmul.f32 1.442695, %v1144_v37  ;;  %v2871_v18 = vmax.f32 %v935_v36, 0.0  ;;  %v1888_v34 = vpop.eup %1887  ;;  %v1155_v37 = vsub.f32 %v2632_v19, %v2875_v3 }
 0x2ee   : > { %v1890_v55 = vpop.eup %1889  ;;  %v1251_v39 = vmul.f32 1.442695, %v1154_v54 }
 0x2ef   : > { %1899 = vpow2.f32 %v1229_v63  ;;  %v1145_v28 = vsub.f32 %v2598_v7, %v2871_v18  ;;  %v1146_v26 = vsub.f32 %v2600_v8, %v2871_v18  ;;  %v1337_v27 = vadd.f32 %v1890_v55, %v1888_v34 }
 0x2f0   : > { %v938_v58 = vpop.xlane.xlu1 %937  ;;  %1901 = vpow2.f32 %v1231_v46  ;;  %v2890_v46 = vmax.f32 %v2796_v17, 0.0  ;;  %v1253_v54 = vmul.f32 1.442695, %v1155_v37  ;;  %v2897_v55 = vmax.f32 %v2808_v14, 0.0 }
 0x2f1   : > { %v2881_v59 = vmax.f32 %v938_v58, 0.0  ;;  %v1892_v50 = vpop.eup %1891  ;;  %v1233_v51 = vmul.f32 1.442695, %v1145_v28  ;;  %v1235_v23 = vmul.f32 1.442695, %v1146_v26  ;;  %1338 = vadd.xlane.f32.xlu1 %v1337_v27  ;;  %1903 = vpow2.f32 %v1249_v4 }
 0x2f2   : > { %v1894_v32 = vpop.eup %1893 }
 0x2f3   : > { %v1147_v62 = vsub.f32 %v2604_v11, %v2881_v59  ;;  %v1148_v7 = vsub.f32 %v2606_v12, %v2881_v59  ;;  %v1340_v31 = vadd.f32 %v1894_v32, %v1892_v50  ;;  %1905 = vpow2.f32 %v1233_v51 }
 0x2f4   : > { %v941_v8 = vpop.xlane.xlu1 %940  ;;  %1907 = vpow2.f32 %v1235_v23  ;;  %v1156_v11 = vsub.f32 %v2635_v40, %v2875_v3  ;;  %v1157_v40 = vsub.f32 %v2641_v45, %v2890_v46  ;;  %v2908_v50 = vmax.f32 %v2816_v35, 0.0  ;;  %v3210_v45 = vld [vmem:[#allocation12_spill] sm:$0xff] }
 0x2f5   : > { %v1237_v36 = vmul.f32 1.442695, %v1147_v62  ;;  %v1239_v63 = vmul.f32 1.442695, %v1148_v7  ;;  %v2892_v34 = vmax.f32 %v941_v8, 0.0  ;;  %v1896_v19 = vpop.eup %1895  ;;  %1909 = vpow2.f32 %v1251_v39  ;;  %1341 = vadd.xlane.f32.xlu1 %v1340_v31  ;;  %v3209_v39 = vld [vmem:[#allocation11_spill] sm:$0xff] }
 0x2f6   : > { %v1898_v12 = vpop.eup %1897  ;;  %v1255_v32 = vmul.f32 1.442695, %v1156_v11  ;;  %v1159_v62 = vsub.f32 %v3210_v45, %v2897_v55  ;;  %v2919_v35 = vmax.f32 %v2824_v57, 0.0  ;;  %v3211_v31 = vld [vmem:[#allocation14_spill] sm:$0xff]  ;;  %v3212_v11 = vld [vmem:[#allocation13_spill] sm:$0xff] }
 0x2f7   : > { %1911 = vpow2.f32 %v1237_v36  ;;  %v1149_v4 = vsub.f32 %v2610_v15, %v2892_v34  ;;  %v1150_v17 = vsub.f32 %v2612_v16, %v2892_v34  ;;  %v1343_v58 = vadd.f32 %v1898_v12, %v1896_v19  ;;  %v3213_v57 = vld [vmem:[#allocation17_spill] sm:$0xff] }
 0x2f8   : > { %v944_v28 = vpop.xlane.xlu1 %943  ;;  %1913 = vpow2.f32 %v1239_v63  ;;  %v1158_v15 = vsub.f32 %v2646_v52, %v2890_v46  ;;  %v1160_v36 = vsub.f32 %v3211_v31, %v2897_v55  ;;  %v1257_v19 = vmul.f32 1.442695, %v1157_v40  ;;  %v3216_v31 = vld [vmem:[#allocation16_spill] sm:$0xff] }
 0x2f9   : > { %v2903_v26 = vmax.f32 %v944_v28, 0.0  ;;  %v1900_v27 = vpop.eup %1899  ;;  %v1241_v14 = vmul.f32 1.442695, %v1149_v4  ;;  %v1243_v51 = vmul.f32 1.442695, %v1150_v17  ;;  %1344 = vadd.xlane.f32.xlu1 %v1343_v58  ;;  %1915 = vpow2.f32 %v1253_v54 }
 0x2fa   : > { %v1902_v23 = vpop.eup %1901  ;;  %v1161_v54 = vsub.f32 %v3212_v11, %v2908_v50  ;;  %v1259_v4 = vmul.f32 1.442695, %v1158_v15  ;;  %v1162_v17 = vsub.f32 %v3213_v57, %v2908_v50  ;;  %v2930_v28 = vmax.f32 %v2832_v43, 0.0  ;;  %v3215_v43 = vld [vmem:[#allocation19_spill] sm:$0xff] }
 0x2fb   : > { %v1151_v16 = vsub.f32 %v2619_v0, %v2903_v26  ;;  %v1152_v37 = vsub.f32 %v3209_v39, %v2903_v26  ;;  %v1346_v8 = vadd.f32 %v1902_v23, %v1900_v27  ;;  %1917 = vpow2.f32 %v1241_v14  ;;  %v2923_v0 = vpop.eup %1903  ;;  %v3214_v14 = vld [vmem:[#allocation15_spill] sm:$0xff] }
 0x2fc   : > { %v971_v7 = vpop.xlane.xlu1 %970  ;;  %1919 = vpow2.f32 %v1243_v51  ;;  %v1261_v27 = vmul.f32 1.442695, %v1159_v62  ;;  %v1163_v23 = vsub.f32 %v3214_v14, %v2919_v35  ;;  %v1263_v39 = vmul.f32 1.442695, %v1160_v36  ;;  %v3217_v36 = vld [vmem:[#allocation20_spill] sm:$0xff] }
 0x2fd   : > { %v1245_v52 = vmul.f32 1.442695, %v1151_v16  ;;  %v1247_v63 = vmul.f32 1.442695, %v1152_v37  ;;  %v1906_v12 = vpop.eup %1905  ;;  %1921 = vpow2.f32 %v1255_v32  ;;  %1347 = vadd.xlane.f32.xlu1 %v1346_v8  ;;  %v2935_v51 = vmax.f32 %v2840_v47, 0.0 }
 0x2fe   : > { %v1908_v58 = vpop.eup %1907  ;;  %v1265_v37 = vmul.f32 1.442695, %v1161_v54  ;;  %v1164_v45 = vsub.f32 %v3215_v43, %v2919_v35  ;;  %v1267_v62 = vmul.f32 1.442695, %v1162_v17  ;;  %v2941_v11 = vmax.f32 %v971_v7, 0.0  ;;  %v3218_v54 = vld [vmem:[#allocation18_spill] sm:$0xff] }
 0x2ff   : > { %1923 = vpow2.f32 %v1245_v52  ;;  %v1910_v16 = vpop.eup %1909  ;;  %v1349_v32 = vadd.f32 %v1908_v58, %v1906_v12  ;;  %v1165_v52 = vsub.f32 %v3216_v31, %v2930_v28  ;;  %v1269_v47 = vmul.f32 1.442695, %v1163_v23  ;;  %v3219_v7 = vld [vmem:[#allocation21_spill] sm:$0xff] }
 0x300   : > { %v974_v40 = vpop.xlane.xlu1 %973  ;;  %1925 = vpow2.f32 %v1247_v63  ;;  %v1166_v63 = vsub.f32 %v3217_v36, %v2930_v28  ;;  %v1167_v57 = vsub.f32 %v3218_v54, %v2935_v51  ;;  %v1271_v17 = vmul.f32 1.442695, %v1164_v45 }
 0x301   : > { %v1912_v15 = vpop.eup %1911  ;;  %1927 = vpow2.f32 %v1257_v19  ;;  %1350 = vadd.xlane.f32.xlu0 %v1349_v32  ;;  %v2947_v58 = vmax.f32 %v974_v40, 0.0  ;;  %v1168_v14 = vsub.f32 %v3219_v7, %v2935_v51  ;;  %v1273_v23 = vmul.f32 1.442695, %v1165_v52 }
 0x302   : > { %v1914_v8 = vpop.eup %1913  ;;  %1929 = vpow2.f32 %v1259_v4  ;;  %v1169_v32 = vsub.f32 %v2677_v41, %v2941_v11  ;;  %v1275_v43 = vmul.f32 1.442695, %v1166_v63  ;;  %v1170_v40 = vsub.f32 %v2735_v5, %v2941_v11 }
 0x303   : > { %1931 = vpow2.f32 %v1261_v27  ;;  %v1352_v19 = vadd.f32 %v1914_v8, %v1912_v15  ;;  %v1916_v4 = vpop.eup %1915  ;;  %v1277_v8 = vmul.f32 1.442695, %v1167_v57  ;;  %v1171_v31 = vsub.f32 %v2684_v56, %v2947_v58 }
 0x304   : > { %v977_v12 = vpop.xlane.xlu1 %976  ;;  %1933 = vpow2.f32 %v1263_v39  ;;  %v1279_v41 = vmul.f32 1.442695, %v1168_v14  ;;  %v1281_v63 = vmul.f32 1.442695, %v1169_v32  ;;  %v1283_v57 = vmul.f32 1.442695, %v1170_v40 }
 0x305   : > { %1935 = vpow2.f32 %v1265_v37  ;;  %1353 = vadd.xlane.f32.xlu1 %v1352_v19  ;;  %v1918_v27 = vpop.eup %1917  ;;  %v2953_v15 = vmax.f32 %v977_v12, 0.0  ;;  %v3220_v12 = vld [vmem:[#allocation22_spill] sm:$0xff]  ;;  %v1285_v14 = vmul.f32 1.442695, %v1171_v31 }
 0x306   : > { %1937 = vpow2.f32 %v1267_v62  ;;  %v1920_v39 = vpop.eup %1919  ;;  %v1172_v19 = vsub.f32 %v3220_v12, %v2947_v58 }
 0x307   : > { %1939 = vpow2.f32 %v1269_v47  ;;  %v1922_v45 = vpop.eup %1921  ;;  %v1355_v36 = vadd.f32 %v1920_v39, %v1918_v27  ;;  %v1173_v5 = vsub.f32 %v2689_v2, %v2953_v15  ;;  %v1174_v56 = vsub.f32 %v2747_v24, %v2953_v15 }
 0x308   : > { %v980_v37 = vpop.xlane.xlu1 %979  ;;  %1941 = vpow2.f32 %v1271_v17  ;;  %v1287_v2 = vmul.f32 1.442695, %v1172_v19 }
 0x309   : > { %v2959_v62 = vmax.f32 %v980_v37, 0.0  ;;  %v1924_v52 = vpop.eup %1923  ;;  %1943 = vpow2.f32 %v1273_v23  ;;  %1356 = vadd.xlane.f32.xlu0 %v1355_v36  ;;  %v1361_v23 = vadd.f32 %v1910_v16, %v2923_v0  ;;  %v1289_v37 = vmul.f32 1.442695, %v1173_v5 }
 0x30a   : > { %v1926_v47 = vpop.eup %1925  ;;  %1945 = vpow2.f32 %v1275_v43  ;;  %v1291_v36 = vmul.f32 1.442695, %v1174_v56 }
 0x30b   : > { %v1928_v54 = vpop.eup %1927  ;;  %v1358_v27 = vadd.f32 %v1926_v47, %v1924_v52  ;;  %1947 = vpow2.f32 %v1277_v8  ;;  %v1175_v39 = vsub.f32 %v2696_v21, %v2959_v62  ;;  %v1176_v43 = vsub.f32 %v2755_v33, %v2959_v62 }
 0x30c   : > { %v983_v7 = vpop.xlane.xlu1 %982  ;;  %v1930_v17 = vpop.eup %1929  ;;  %1949 = vpow2.f32 %v1279_v41  ;;  %v1364_v8 = vadd.f32 %v1922_v45, %v1916_v4 }
 0x30d   : > { %v1932_v32 = vpop.eup %1931  ;;  %v2972_v40 = vmax.f32 %v983_v7, 0.0  ;;  %1359 = vadd.xlane.f32.xlu1 %v1358_v27  ;;  %1951 = vpow2.f32 %v1281_v63  ;;  %1362 = vadd.xlane.f32.xlu0 %v1361_v23  ;;  %v1293_v33 = vmul.f32 1.442695, %v1175_v39  ;;  %v1367_v41 = vadd.f32 %v1930_v17, %v1928_v54 }
 0x30e   : > { %v1934_v24 = vpop.eup %1933  ;;  %1953 = vpow2.f32 %v1283_v57  ;;  %v1295_v47 = vmul.f32 1.442695, %v1176_v43 }
 0x30f   : > { %v1936_v31 = vpop.eup %1935  ;;  %v1177_v21 = vsub.f32 %v2701_v49, %v2972_v40  ;;  %v1178_v0 = vsub.f32 %v2765_v44, %v2972_v40  ;;  %1955 = vpow2.f32 %v1285_v14  ;;  %v1370_v54 = vadd.f32 %v1934_v24, %v1932_v32 }
 0x310   : > { %v986_v16 = vpop.xlane.xlu1 %985  ;;  %v1938_v52 = vpop.eup %1937  ;;  %1957 = vpow2.f32 %v1287_v2 }
 0x311   : > { %v2978_v12 = vmax.f32 %v986_v16, 0.0  ;;  %v1940_v19 = vpop.eup %1939  ;;  %1365 = vadd.xlane.f32.xlu1 %v1364_v8  ;;  %1959 = vpow2.f32 %v1289_v37  ;;  %v1297_v4 = vmul.f32 1.442695, %v1177_v21  ;;  %1368 = vadd.xlane.f32.xlu0 %v1367_v41  ;;  %v1299_v63 = vmul.f32 1.442695, %v1178_v0 }
 0x312   : > { %v1942_v45 = vpop.eup %1941  ;;  %1961 = vpow2.f32 %v1291_v36  ;;  %v1373_v56 = vadd.f32 %v1938_v52, %v1936_v31 }
 0x313   : > { %v1179_v49 = vsub.f32 %v2708_v6, %v2978_v12  ;;  %v1180_v44 = vsub.f32 %v2771_v60, %v2978_v12  ;;  %v1944_v57 = vpop.eup %1943  ;;  %1963 = vpow2.f32 %v1293_v33  ;;  %v1376_v2 = vadd.f32 %v1942_v45, %v1940_v19 }
 0x314   : > { %v989_v5 = vpop.xlane.xlu1 %988  ;;  %v1946_v7 = vpop.eup %1945  ;;  %1965 = vpow2.f32 %v1295_v47 }
 0x315   : > { %v1301_v27 = vmul.f32 1.442695, %v1179_v49  ;;  %v2984_v17 = vmax.f32 %v989_v5, 0.0  ;;  %1371 = vadd.xlane.f32.xlu1 %v1370_v54  ;;  %v1948_v14 = vpop.eup %1947  ;;  %1967 = vpow2.f32 %v1297_v4  ;;  %v1303_v6 = vmul.f32 1.442695, %v1180_v44  ;;  %1374 = vadd.xlane.f32.xlu0 %v1373_v56 }
 0x316   : > { %v1950_v39 = vpop.eup %1949  ;;  %1969 = vpow2.f32 %v1299_v63  ;;  %v1379_v24 = vadd.f32 %v1946_v7, %v1944_v57 }
 0x317   : > { %v1181_v60 = vsub.f32 %v2712_v61, %v2984_v17  ;;  %v1182_v23 = vsub.f32 %v2777_v25, %v2984_v17  ;;  %v1952_v43 = vpop.eup %1951  ;;  %1971 = vpow2.f32 %v1301_v27  ;;  %v1382_v16 = vadd.f32 %v1950_v39, %v1948_v14 }
 0x318   : > { %v992_v32 = vpop.xlane.xlu1 %991  ;;  %v1954_v8 = vpop.eup %1953  ;;  %1973 = vpow2.f32 %v1303_v6 }
 0x319   : > { %v2990_v37 = vmax.f32 %v992_v32, 0.0  ;;  %v1305_v31 = vmul.f32 1.442695, %v1181_v60  ;;  %v1307_v36 = vmul.f32 1.442695, %v1182_v23  ;;  %1377 = vadd.xlane.f32.xlu1 %v1376_v2  ;;  %v1956_v21 = vpop.eup %1955  ;;  %1380 = vadd.xlane.f32.xlu0 %v1379_v24  ;;  %v1385_v19 = vadd.f32 %v1954_v8, %v1952_v43  ;;  %v3221_v43 = vld [vmem:[#allocation23_spill] sm:$0xff] }
 0x31a   : > { %v1958_v0 = vpop.eup %1957  ;;  %v1026_v2 = vsub.f32 0.0, %v2788_v22  ;;  %v1025_v24 = vsub.f32 0.0, %v3221_v43  ;;  %v3222_v8 = vld [vmem:[#allocation24_spill] sm:$0xff] }
 0x31b   : > { %v1183_v61 = vsub.f32 %v2716_v48, %v2990_v37  ;;  %v1184_v25 = vsub.f32 %v2782_v13, %v2990_v37  ;;  %v1960_v52 = vpop.eup %1959  ;;  %1975 = vpow2.f32 %v1305_v31  ;;  %v1388_v44 = vadd.f32 %v1958_v0, %v1956_v21  ;;  %v3223_v21 = vld [vmem:[#allocation25_spill] sm:$0xff] }
 0x31c   : > { %v1962_v47 = vpop.eup %1961  ;;  %1977 = vpow2.f32 %v1307_v36  ;;  %v1315_v23 = vpop.xlane.xlu1 %1314  ;;  %v1027_v31 = vsub.f32 0.0, %v3222_v8  ;;  %v1059_v36 = vmul.f32 1.442695, %v1026_v2 }
 0x31d   : > { %v1309_v33 = vmul.f32 1.442695, %v1183_v61  ;;  %v1311_v41 = vmul.f32 1.442695, %v1184_v25  ;;  %1383 = vadd.xlane.f32.xlu1 %v1382_v16  ;;  %v1964_v4 = vpop.eup %1963  ;;  %1386 = vadd.xlane.f32.xlu0 %v1385_v19  ;;  %v1391_v48 = vadd.f32 %v1962_v47, %v1960_v52  ;;  %v1028_v61 = vsub.f32 0.0, %v3223_v21 }
 0x31e   : > { %v1966_v49 = vpop.eup %1965  ;;  %v1057_v25 = vmul.f32 1.442695, %v1025_v24  ;;  %v1061_v16 = vmul.f32 1.442695, %v1027_v31  ;;  %v1029_v52 = vsub.f32 0.0, %v2810_v53 }
 0x31f   : > { %1979 = vpow2.f32 %v1309_v33  ;;  %v1968_v45 = vpop.eup %1967  ;;  %v1394_v5 = vadd.f32 %v1966_v49, %v1964_v4  ;;  %v1063_v33 = vmul.f32 1.442695, %v1028_v61  ;;  %v1031_v4 = vsub.f32 0.0, %v2826_v10 }
 0x320   : > { %1981 = vpow2.f32 %v1311_v41  ;;  %v1970_v63 = vpop.eup %1969  ;;  %v1030_v41 = vsub.f32 0.0, %v2818_v1  ;;  %v1065_v47 = vmul.f32 1.442695, %v1029_v52 }
 0x321   : > { %1389 = vadd.xlane.f32.xlu1 %v1388_v44  ;;  %1392 = vadd.xlane.f32.xlu0 %v1391_v48  ;;  %v1972_v13 = vpop.eup %1971  ;;  %v1397_v57 = vadd.f32 %v1970_v63, %v1968_v45  ;;  %1983 = vpow2.f32 %v1059_v36  ;;  %v1032_v44 = vsub.f32 0.0, %v2834_v38  ;;  %v1033_v45 = vsub.f32 0.0, %v2842_v29 }
 0x322   : > { %v1974_v54 = vpop.eup %1973  ;;  %1985 = vpow2.f32 %v1057_v25  ;;  %v1067_v49 = vmul.f32 1.442695, %v1030_v41  ;;  %v1069_v63 = vmul.f32 1.442695, %v1031_v4  ;;  %v1036_v25 = vsub.f32 0.0, %v2863_v20 }
 0x323   : > { %v1400_v27 = vadd.f32 %v1974_v54, %v1972_v13  ;;  %1987 = vpow2.f32 %v1061_v16  ;;  %v1034_v13 = vsub.f32 0.0, %v2848_v30  ;;  %v1073_v54 = vmul.f32 1.442695, %v1033_v45 }
 0x324   : > { %1989 = vpow2.f32 %v1063_v33  ;;  %v1042_v41 = vsub.f32 0.0, %v2875_v3 }
 0x325   : > { %1395 = vadd.xlane.f32.xlu1 %v1394_v5  ;;  %v1976_v56 = vpop.eup %1975  ;;  %1398 = vadd.xlane.f32.xlu0 %v1397_v57  ;;  %1991 = vpow2.f32 %v1065_v47  ;;  %v1071_v5 = vmul.f32 1.442695, %v1032_v44 }
 0x326   : > { %v1978_v7 = vpop.eup %1977  ;;  %1993 = vpow2.f32 %v1067_v49  ;;  %v1091_v45 = vmul.f32 1.442695, %v1042_v41 }
 0x327   : > { %v1403_v14 = vadd.f32 %v1978_v7, %v1976_v56  ;;  %1995 = vpow2.f32 %v1069_v63  ;;  %v1075_v7 = vmul.f32 1.442695, %v1034_v13 }
 0x328   : > { %1997 = vpow2.f32 %v1071_v5 }
 0x329   : > { %v1980_v6 = vpop.eup %1979  ;;  %1401 = vadd.xlane.f32.xlu1 %v1400_v27  ;;  %1404 = vadd.xlane.f32.xlu0 %v1403_v14  ;;  %v1035_v27 = vsub.f32 0.0, %v2854_v9  ;;  %1999 = vpow2.f32 %v1073_v54 }
 0x32a   : > { %v1982_v39 = vpop.eup %1981  ;;  %2001 = vpow2.f32 %v1075_v7 }
 0x32b   : > { %v1406_v60 = vadd.f32 %v1982_v39, %v1980_v6  ;;  %v1984_v56 = vpop.eup %1983  ;;  %v1077_v61 = vmul.f32 1.442695, %v1035_v27 }
 0x32c   : > { %v1986_v14 = vpop.eup %1985 }
 0x32d   : > { %1407 = vadd.xlane.f32.xlu1 %v1406_v60  ;;  %v1988_v39 = vpop.eup %1987  ;;  %v1041_v60 = vsub.f32 0.0, %v2857_v42  ;;  %v1409_v2 = vadd.f32 %v1986_v14, %v1315_v23  ;;  %v1079_v23 = vmul.f32 1.442695, %v1036_v25 }
 0x32e   : > { %v1990_v36 = vpop.eup %1989 }
 0x32f   : > { %v1992_v52 = vpop.eup %1991  ;;  %v1089_v33 = vmul.f32 1.442695, %v1041_v60 }
 0x330   : > { %v1994_v4 = vpop.eup %1993 }
 0x331   : > { %v1996_v44 = vpop.eup %1995 }
 0x332   : > { %v1998_v5 = vpop.eup %1997 }
 0x34a   : > { %v1318_v32 = vpop.xlane.xlu1 %1317 }
 0x34b   : > { %v1410_v6 = vadd.f32 %v1984_v56, %v1318_v32  ;;  %v2000_v56 = vpop.eup %1999 }
 0x34c   : > { %v2002_v27 = vpop.eup %2001 }
 0x34d   : > { %2003 = vlog2.f32 %v1410_v6 }
 0x34e   : > { %v1321_v0 = vpop.xlane.xlu1 %1320  ;;  %2005 = vlog2.f32 %v1409_v2 }
 0x34f   : > { %v1411_v24 = vadd.f32 %v1988_v39, %v1321_v0  ;;  %v1037_v0 = vsub.f32 0.0, %v2871_v18 }
 0x351   : > { %2007 = vlog2.f32 %v1411_v24  ;;  %v1081_v54 = vmul.f32 1.442695, %v1037_v0  ;;  %v1045_v24 = vsub.f32 0.0, %v2908_v50 }
 0x352   : > { %2009 = vpow2.f32 %v1077_v61  ;;  %v1039_v61 = vsub.f32 0.0, %v2892_v34 }
 0x353   : > { %v1097_v0 = vmul.f32 1.442695, %v1045_v24 }
 0x356   : > { %v1324_v19 = vpop.xlane.xlu1 %1323 }
 0x357   : > { %v1412_v16 = vadd.f32 %v1990_v36, %v1324_v19  ;;  %v1043_v19 = vsub.f32 0.0, %v2890_v46  ;;  %v2004_v6 = vpop.eup %2003 }
 0x358   : > { %v2006_v2 = vpop.eup %2005 }
 0x359   : > { %2011 = vlog2.f32 %v1412_v16  ;;  %v1093_v14 = vmul.f32 1.442695, %v1043_v19  ;;  %v1085_v19 = vmul.f32 1.442695, %v1039_v61 }
 0x35a   : > { %2013 = vpow2.f32 %v1089_v33  ;;  %v1444_v33 = vmul.f32 0.6931472, %v2004_v6 }
 0x35b   : > { %v2008_v36 = vpop.eup %2007 }
 0x35c   : > { %v2010_v16 = vpop.eup %2009 }
 0x35e   : > { %v1327_v48 = vpop.xlane.xlu1 %1326 }
 0x35f   : > { %v1413_v32 = vadd.f32 %v1992_v52, %v1327_v48  ;;  %v1038_v48 = vsub.f32 0.0, %v2881_v59 }
 0x361   : > { %2015 = vlog2.f32 %v1413_v32  ;;  %v1040_v32 = vsub.f32 0.0, %v2903_v26 }
 0x362   : > { %2017 = vpow2.f32 %v1079_v23 }
 0x363   : > { %v2012_v41 = vpop.eup %2011 }
 0x364   : > { %v3017_v23 = vpop.eup %2013 }
 0x366   : > { %v1330_v57 = vpop.xlane.xlu1 %1329 }
 0x367   : > { %v1414_v49 = vadd.f32 %v1994_v4, %v1330_v57  ;;  %v1044_v57 = vsub.f32 0.0, %v2897_v55 }
 0x369   : > { %2019 = vlog2.f32 %v1414_v49  ;;  %v1095_v52 = vmul.f32 1.442695, %v1044_v57  ;;  %v1446_v49 = vmul.f32 0.6931472, %v2008_v36 }
 0x36a   : > { %2021 = vpow2.f32 %v1091_v45 }
 0x36b   : > { %v2016_v45 = vpop.eup %2015  ;;  %v1507_v57 = vadd.f32 %v1446_v49, %v3222_v8 }
 0x36c   : > { %v1450_v6 = vmul.f32 0.6931472, %v2016_v45 }
 0x36e   : > { %v1333_v31 = vpop.xlane.xlu1 %1332 }
 0x36f   : > { %v1415_v63 = vadd.f32 %v1996_v44, %v1333_v31  ;;  %v1083_v31 = vmul.f32 1.442695, %v1038_v48  ;;  %v1046_v48 = vsub.f32 0.0, %v2919_v35 }
 0x371   : > { %2023 = vlog2.f32 %v1415_v63  ;;  %v2018_v63 = vpop.eup %2017 }
 0x372   : > { %2025 = vpow2.f32 %v1081_v54 }
 0x373   : > { %v2020_v54 = vpop.eup %2019 }
 0x374   : > { %v1452_v36 = vmul.f32 0.6931472, %v2020_v54 }
 0x376   : > { %v1336_v47 = vpop.xlane.xlu1 %1335 }
 0x377   : > { %v1416_v7 = vadd.f32 %v1998_v5, %v1336_v47  ;;  %v1442_v47 = vmul.f32 0.6931472, %v2006_v2  ;;  %v1448_v5 = vmul.f32 0.6931472, %v2012_v41  ;;  %v1047_v2 = vsub.f32 0.0, %v2930_v28 }
 0x378   : > { %v1509_v41 = vadd.f32 %v1450_v6, %v2810_v53  ;;  %v1051_v53 = vsub.f32 0.0, %v2953_v15 }
 0x379   : > { %2027 = vlog2.f32 %v1416_v7  ;;  %v1505_v7 = vadd.f32 %v1442_v47, %v3221_v43  ;;  %v1508_v43 = vadd.f32 %v1448_v5, %v3223_v21  ;;  %v1049_v21 = vsub.f32 0.0, %v2941_v11 }
 0x37a   : > { %2029 = vpow2.f32 %v1093_v14  ;;  %v3022_v14 = vpop.eup %2021 }
 0x37b   : > { %v1538_v8 = vsel %vm1537_vm2, %v1505_v7, 0.0 }
 0x37e   : > { %v1339_v13 = vpop.xlane.xlu1 %1338 }
 0x37f   : > { %v1417_v39 = vadd.f32 %v2000_v56, %v1339_v13  ;;  %v1506_v13 = vadd.f32 %v1444_v33, %v2788_v22  ;;  %v1087_v56 = vmul.f32 1.442695, %v1040_v32  ;;  %v1048_v22 = vsub.f32 0.0, %v2935_v51 }
 0x380   : > { %v1541_v33 = vsel %vm1537_vm2, %v1507_v57, 0.0  ;;  %v1545_v57 = vsel %vm1537_vm2, %v1509_v41, 0.0 }
 0x381   : > { %2031 = vlog2.f32 %v1417_v39  ;;  %v1103_v49 = vmul.f32 1.442695, %v1048_v22 }
 0x382   : > { %v1342_v60 = vpop.xlane.xlu1 %1341  ;;  %2033 = vpow2.f32 %v1083_v31  ;;  %v1539_v31 = vsel %vm1537_vm2, %v1506_v13, 0.0 }
 0x383   : > { %v1418_v25 = vadd.f32 %v2002_v27, %v1342_v60  ;;  %v2024_v60 = vpop.eup %2023 }
 0x384   : > { %v2026_v24 = vpop.eup %2025  ;;  %v1454_v32 = vmul.f32 0.6931472, %v2024_v60 }
 0x385   : > { %2035 = vlog2.f32 %v1418_v25  ;;  %v2028_v61 = vpop.eup %2027  ;;  %v1099_v25 = vmul.f32 1.442695, %v1046_v48  ;;  %v1050_v48 = vsub.f32 0.0, %v2947_v58 }
 0x386   : > { %v1345_v4 = vpop.xlane.xlu1 %1344  ;;  %2037 = vpow2.f32 %v1095_v52  ;;  %v3030_v52 = vpop.eup %2029  ;;  %v1456_v13 = vmul.f32 0.6931472, %v2028_v61  ;;  %v1511_v6 = vadd.f32 %v1454_v32, %v2826_v10 }
 0x387   : > { %v1419_v44 = vadd.f32 %v2010_v16, %v1345_v4  ;;  %v1107_v61 = vmul.f32 1.442695, %v1050_v48 }
 0x389   : > { %2039 = vlog2.f32 %v1419_v44  ;;  %v1540_v44 = vadd.f32 %v1539_v31, %v1538_v8  ;;  %v1512_v31 = vadd.f32 %v1456_v13, %v2834_v38 }
 0x38a   : > { %v1348_v27 = vpop.xlane.xlu1 %1347  ;;  %2041 = vpow2.f32 %v1097_v0  ;;  %v1101_v0 = vmul.f32 1.442695, %v1047_v2 }
 0x38b   : > { %v1420_v39 = vadd.f32 %v2018_v63, %v1348_v27  ;;  %2043 = vpow2.f32 %v1085_v19  ;;  %v2032_v4 = vpop.eup %2031  ;;  %v1543_v19 = vsel %vm1537_vm2, %v1508_v43, 0.0  ;;  %v1510_v63 = vadd.f32 %v1452_v36, %v2818_v1 }
 0x38c   : > { %v2034_v45 = vpop.eup %2033  ;;  %v1105_v1 = vmul.f32 1.442695, %v1049_v21  ;;  %v1551_v38 = vsel %vm1537_vm2, %v1512_v31, 0.0 }
 0x38d   : > { %2045 = vlog2.f32 %v1420_v39  ;;  %v1458_v39 = vmul.f32 0.6931472, %v2032_v4 }
 0x38e   : > { %2047 = vpow2.f32 %v1087_v56  ;;  %v1351_v16 = vpop.xlane.xlu0 %1350  ;;  %v1542_v56 = vadd.f32 %v1541_v33, %v1540_v44  ;;  %v1549_v33 = vsel %vm1537_vm2, %v1511_v6, 0.0 }
 0x38f   : > { %v1421_v47 = vadd.f32 %v2026_v24, %v1351_v16  ;;  %v2036_v54 = vpop.eup %2035  ;;  %v1547_v24 = vsel %vm1537_vm2, %v1510_v63, 0.0  ;;  %v1513_v41 = vadd.f32 %v1458_v39, %v2842_v29 }
 0x390   : > { %v3039_v27 = vpop.eup %2037  ;;  %v1544_v2 = vadd.f32 %v1543_v19, %v1542_v56  ;;  %v1460_v43 = vmul.f32 0.6931472, %v2036_v54  ;;  %v1053_v19 = vsub.f32 0.0, %v2972_v40 }
 0x391   : > { %2049 = vlog2.f32 %v1421_v47  ;;  %v1553_v54 = vsel %vm1537_vm2, %v1513_v41, 0.0 }
 0x392   : > { %v1354_v5 = vpop.xlane.xlu1 %1353  ;;  %2051 = vpow2.f32 %v1099_v25  ;;  %v1109_v25 = vmul.f32 1.442695, %v1051_v53  ;;  %v1546_v8 = vadd.f32 %v1545_v57, %v1544_v2  ;;  %v1113_v2 = vmul.f32 1.442695, %v1053_v19 }
 0x393   : > { %v1422_v7 = vadd.f32 %v2034_v45, %v1354_v5  ;;  %v2040_v60 = vpop.eup %2039 }
 0x394   : > { %v3043_v22 = vpop.eup %2041  ;;  %v1462_v32 = vmul.f32 0.6931472, %v2040_v60  ;;  %v1548_v21 = vadd.f32 %v1547_v24, %v1546_v8  ;;  %v1054_v24 = vsub.f32 0.0, %v2978_v12 }
 0x395   : > { %2053 = vlog2.f32 %v1422_v7  ;;  %v2044_v36 = vpop.eup %2043 }
 0x396   : > { %2055 = vpow2.f32 %v1101_v0  ;;  %v1357_v16 = vpop.xlane.xlu0 %1356  ;;  %v1052_v0 = vsub.f32 0.0, %v2959_v62  ;;  %v1550_v63 = vadd.f32 %v1549_v33, %v1548_v21  ;;  %v1515_v48 = vadd.f32 %v1462_v32, %v2854_v9 }
 0x397   : > { %2057 = vpow2.f32 %v1103_v49  ;;  %v2046_v10 = vpop.eup %2045  ;;  %v1423_v47 = vadd.f32 %v2044_v36, %v1357_v16  ;;  %v1514_v49 = vadd.f32 %v1460_v43, %v2848_v30 }
 0x398   : > { %v2048_v4 = vpop.eup %2047  ;;  %2059 = vpow2.f32 %v1105_v1  ;;  %v1464_v44 = vmul.f32 0.6931472, %v2046_v10  ;;  %v1552_v56 = vadd.f32 %v1551_v38, %v1550_v63  ;;  %v1111_v57 = vmul.f32 1.442695, %v1052_v0 }
 0x399   : > { %2061 = vlog2.f32 %v1423_v47  ;;  %v1555_v6 = vsel %vm1537_vm2, %v1514_v49, 0.0  ;;  %v1557_v36 = vsel %vm1537_vm2, %v1515_v48, 0.0 }
 0x39a   : > { %v1360_v45 = vpop.xlane.xlu1 %1359  ;;  %2063 = vpow2.f32 %v1107_v61  ;;  %v1363_v29 = vpop.xlane.xlu0 %1362  ;;  %v1516_v39 = vadd.f32 %v1464_v44, %v2863_v20  ;;  %v1554_v31 = vadd.f32 %v1553_v54, %v1552_v56 }
 0x39b   : > { %v1424_v13 = vadd.f32 %v2048_v4, %v1360_v45  ;;  %v2050_v5 = vpop.eup %2049  ;;  %2065 = vpow2.f32 %v1109_v25  ;;  %v1425_v53 = vadd.f32 %v3017_v23, %v1363_v29 }
 0x39c   : > { %v1466_v7 = vmul.f32 0.6931472, %v2050_v5  ;;  %v2052_v30 = vpop.eup %2051  ;;  %v1556_v20 = vadd.f32 %v1555_v6, %v1554_v31  ;;  %v1559_v10 = vsel %vm1537_vm2, %v1516_v39, 0.0 }
 0x39d   : > { %2067 = vlog2.f32 %v1424_v13 }
 0x39e   : > { %2069 = vlog2.f32 %v1425_v53  ;;  %v1366_v60 = vpop.xlane.xlu1 %1365  ;;  %v1369_v43 = vpop.xlane.xlu0 %1368  ;;  %v1517_v61 = vadd.f32 %v1466_v7, %v2871_v18  ;;  %v1558_v47 = vadd.f32 %v1557_v36, %v1556_v20 }
 0x39f   : > { %v2054_v1 = vpop.eup %2053  ;;  %v1426_v9 = vadd.f32 %v3022_v14, %v1366_v60  ;;  %v1427_v8 = vadd.f32 %v3030_v52, %v1369_v43  ;;  %v1055_v14 = vsub.f32 0.0, %v2984_v17  ;;  %v1115_v52 = vmul.f32 1.442695, %v1054_v24 }
 0x3a0   : > { %v2056_v23 = vpop.eup %2055  ;;  %v1468_v25 = vmul.f32 0.6931472, %v2054_v1  ;;  %v1561_v21 = vsel %vm1537_vm2, %v1517_v61, 0.0  ;;  %v1560_v44 = vadd.f32 %v1559_v10, %v1558_v47 }
 0x3a1   : > { %v2058_v16 = vpop.eup %2057  ;;  %2071 = vlog2.f32 %v1426_v9  ;;  %v1117_v29 = vmul.f32 1.442695, %v1055_v14 }
 0x3a2   : > { %v1518_v33 = vadd.f32 %v1468_v25, %v2881_v59  ;;  %2073 = vlog2.f32 %v1427_v8  ;;  %v1372_v41 = vpop.xlane.xlu1 %1371  ;;  %v2060_v32 = vpop.eup %2059 }
 0x3a3   : > { %2075 = vpow2.f32 %v1111_v57  ;;  %v1428_v4 = vadd.f32 %v3039_v27, %v1372_v41  ;;  %v1375_v18 = vpop.xlane.xlu0 %1374  ;;  %v2062_v0 = vpop.eup %2061  ;;  %v1562_v27 = vadd.f32 %v1561_v21, %v1560_v44 }
 0x3a4   : > { %2077 = vpow2.f32 %v1113_v2  ;;  %v1429_v38 = vadd.f32 %v3043_v22, %v1375_v18  ;;  %v2064_v49 = vpop.eup %2063  ;;  %v1470_v59 = vmul.f32 0.6931472, %v2062_v0  ;;  %v1563_v19 = vsel %vm1537_vm2, %v1518_v33, 0.0 }
 0x3a5   : > { %2079 = vlog2.f32 %v1428_v4  ;;  %v2066_v45 = vpop.eup %2065  ;;  %v1056_v22 = vsub.f32 0.0, %v2990_v37  ;;  %v1564_v57 = vadd.f32 %v1563_v19, %v1562_v27 }
 0x3a6   : > { %2081 = vlog2.f32 %v1429_v38  ;;  %v1378_v63 = vpop.xlane.xlu1 %1377  ;;  %v1519_v5 = vadd.f32 %v1470_v59, %v2892_v34 }
 0x3a7   : > { %v2068_v13 = vpop.eup %2067  ;;  %v1430_v54 = vadd.f32 %v2052_v30, %v1378_v63  ;;  %v1381_v48 = vpop.xlane.xlu0 %1380  ;;  %2083 = vpow2.f32 %v1115_v52  ;;  %v1119_v43 = vmul.f32 1.442695, %v1056_v22 }
 0x3a8   : > { %v2070_v53 = vpop.eup %2069  ;;  %v1472_v56 = vmul.f32 0.6931472, %v2068_v13  ;;  %v1431_v7 = vadd.f32 %v2056_v23, %v1381_v48  ;;  %v1565_v6 = vsel %vm1537_vm2, %v1519_v5, 0.0 }
 0x3a9   : > { %v1474_v39 = vmul.f32 0.6931472, %v2070_v53  ;;  %2085 = vlog2.f32 %v1430_v54  ;;  %v1566_v34 = vadd.f32 %v1565_v6, %v1564_v57 }
 0x3aa   : > { %v1520_v60 = vadd.f32 %v1472_v56, %v2903_v26  ;;  %2087 = vlog2.f32 %v1431_v7  ;;  %v1384_v1 = vpop.xlane.xlu1 %1383 }
 0x3ab   : > { %v2072_v2 = vpop.eup %2071  ;;  %2089 = vpow2.f32 %v1117_v29  ;;  %v1521_v30 = vadd.f32 %v1474_v39, %v2857_v42  ;;  %v1432_v24 = vadd.f32 %v2058_v16, %v1384_v1  ;;  %v1387_v31 = vpop.xlane.xlu0 %1386 }
 0x3ac   : > { %v2074_v9 = vpop.eup %2073  ;;  %v1567_v23 = vsel %vm1537_vm2, %v1520_v60, 0.0  ;;  %v1476_v36 = vmul.f32 0.6931472, %v2072_v2  ;;  %v1433_v61 = vadd.f32 %v2060_v32, %v1387_v31 }
 0x3ad   : > { %v2076_v25 = vpop.eup %2075  ;;  %v1568_v8 = vadd.f32 %v1567_v23, %v1566_v34  ;;  %v1478_v20 = vmul.f32 0.6931472, %v2074_v9  ;;  %2091 = vlog2.f32 %v1432_v24  ;;  %v1569_v10 = vsel %vm1537_vm2, %v1521_v30, 0.0 }
 0x3ae   : > { %v2078_v26 = vpop.eup %2077  ;;  %v1522_v33 = vadd.f32 %v1476_v36, %v2875_v3  ;;  %2093 = vlog2.f32 %v1433_v61  ;;  %v1390_v41 = vpop.xlane.xlu1 %1389 }
 0x3af   : > { %v2080_v42 = vpop.eup %2079  ;;  %v1570_v16 = vadd.f32 %v1569_v10, %v1568_v8  ;;  %v1523_v14 = vadd.f32 %v1478_v20, %v2890_v46  ;;  %v1434_v47 = vadd.f32 %v2064_v49, %v1390_v41  ;;  %v1393_v4 = vpop.xlane.xlu0 %1392  ;;  %2095 = vpow2.f32 %v1119_v43 }
 0x3b0   : > { %v2082_v18 = vpop.eup %2081  ;;  %v1571_v32 = vsel %vm1537_vm2, %v1522_v33, 0.0  ;;  %v1480_v0 = vmul.f32 0.6931472, %v2080_v42  ;;  %v1435_v52 = vadd.f32 %v2066_v45, %v1393_v4 }
 0x3b1   : > { %v1572_v21 = vadd.f32 %v1571_v32, %v1570_v16  ;;  %v1482_v38 = vmul.f32 0.6931472, %v2082_v18  ;;  %2097 = vlog2.f32 %v1434_v47  ;;  %v2084_v44 = vpop.eup %2083  ;;  %v1573_v3 = vsel %vm1537_vm2, %v1523_v14, 0.0 }
 0x3b2   : > { %v1524_v59 = vadd.f32 %v1480_v0, %v2897_v55  ;;  %2099 = vlog2.f32 %v1435_v52  ;;  %v1396_v19 = vpop.xlane.xlu1 %1395 }
 0x3b3   : > { %v2086_v63 = vpop.eup %2085  ;;  %v1574_v46 = vadd.f32 %v1573_v3, %v1572_v21  ;;  %v1525_v49 = vadd.f32 %v1482_v38, %v2908_v50  ;;  %v1436_v13 = vadd.f32 %v2076_v25, %v1396_v19  ;;  %v1399_v29 = vpop.xlane.xlu0 %1398 }
 0x3b4   : > { %v2088_v27 = vpop.eup %2087  ;;  %v1575_v5 = vsel %vm1537_vm2, %v1524_v59, 0.0  ;;  %v1484_v45 = vmul.f32 0.6931472, %v2086_v63  ;;  %v1437_v54 = vadd.f32 %v2078_v26, %v1399_v29 }
 0x3b5   : > { %v2090_v48 = vpop.eup %2089  ;;  %v1576_v53 = vadd.f32 %v1575_v5, %v1574_v46  ;;  %v1486_v22 = vmul.f32 0.6931472, %v2088_v27  ;;  %2101 = vlog2.f32 %v1436_v13  ;;  %v1577_v56 = vsel %vm1537_vm2, %v1525_v49, 0.0 }
 0x3b6   : > { %v1526_v55 = vadd.f32 %v1484_v45, %v2919_v35  ;;  %2103 = vlog2.f32 %v1437_v54  ;;  %v1402_v7 = vpop.xlane.xlu1 %1401 }
 0x3b7   : > { %v2092_v57 = vpop.eup %2091  ;;  %v1578_v6 = vadd.f32 %v1577_v56, %v1576_v53  ;;  %v1527_v50 = vadd.f32 %v1486_v22, %v2930_v28  ;;  %v1438_v39 = vadd.f32 %v2084_v44, %v1402_v7  ;;  %v1405_v60 = vpop.xlane.xlu0 %1404 }
 0x3b8   : > { %v2094_v1 = vpop.eup %2093  ;;  %v1579_v2 = vsel %vm1537_vm2, %v1526_v55, 0.0  ;;  %v1488_v34 = vmul.f32 0.6931472, %v2092_v57  ;;  %v1439_v30 = vadd.f32 %v2090_v48, %v1405_v60 }
 0x3b9   : > { %v1580_v24 = vadd.f32 %v1579_v2, %v1578_v6  ;;  %v1490_v31 = vmul.f32 0.6931472, %v2094_v1  ;;  %2105 = vlog2.f32 %v1438_v39  ;;  %v2096_v9 = vpop.eup %2095  ;;  %v1581_v43 = vsel %vm1537_vm2, %v1527_v50, 0.0 }
 0x3ba   : > { %v1528_v35 = vadd.f32 %v1488_v34, %v2935_v51  ;;  %2107 = vlog2.f32 %v1439_v30  ;;  %v1408_v23 = vpop.xlane.xlu1 %1407 }
 0x3bb   : > { %v2098_v36 = vpop.eup %2097  ;;  %v1582_v61 = vadd.f32 %v1581_v43, %v1580_v24  ;;  %v1529_v28 = vadd.f32 %v1490_v31, %v2941_v11  ;;  %v1440_v25 = vadd.f32 %v2096_v9, %v1408_v23 }
 0x3bc   : > { %v2100_v8 = vpop.eup %2099  ;;  %v1583_v20 = vsel %vm1537_vm2, %v1528_v35, 0.0  ;;  %v1492_v26 = vmul.f32 0.6931472, %v2098_v36 }
 0x3bd   : > { %v1584_v10 = vadd.f32 %v1583_v20, %v1582_v61  ;;  %v1494_v33 = vmul.f32 0.6931472, %v2100_v8  ;;  %2109 = vlog2.f32 %v1440_v25  ;;  %v1585_v41 = vsel %vm1537_vm2, %v1529_v28, 0.0 }
 0x3be   : > { %v1530_v42 = vadd.f32 %v1492_v26, %v2947_v58 }
 0x3bf   : > { %v2102_v16 = vpop.eup %2101  ;;  %v1586_v51 = vadd.f32 %v1585_v41, %v1584_v10  ;;  %v1531_v14 = vadd.f32 %v1494_v33, %v2953_v15 }
 0x3c0   : > { %v2104_v47 = vpop.eup %2103  ;;  %v1587_v4 = vsel %vm1537_vm2, %v1530_v42, 0.0  ;;  %v1496_v11 = vmul.f32 0.6931472, %v2102_v16 }
 0x3c1   : > { %v1588_v18 = vadd.f32 %v1587_v4, %v1586_v51  ;;  %v1498_v32 = vmul.f32 0.6931472, %v2104_v47  ;;  %v1589_v0 = vsel %vm1537_vm2, %v1531_v14, 0.0 }
 0x3c2   : > { %v1532_v52 = vadd.f32 %v1496_v11, %v2959_v62 }
 0x3c3   : > { %v2106_v21 = vpop.eup %2105  ;;  %v1590_v38 = vadd.f32 %v1589_v0, %v1588_v18  ;;  %v1533_v44 = vadd.f32 %v1498_v32, %v2972_v40 }
 0x3c4   : > { %v2108_v3 = vpop.eup %2107  ;;  %v1591_v58 = vsel %vm1537_vm2, %v1532_v52, 0.0  ;;  %v1500_v59 = vmul.f32 0.6931472, %v2106_v21 }
 0x3c5   : > { %v1592_v19 = vadd.f32 %v1591_v58, %v1590_v38  ;;  %v1502_v15 = vmul.f32 0.6931472, %v2108_v3  ;;  %v1593_v63 = vsel %vm1537_vm2, %v1533_v44, 0.0 }
 0x3c6   : > { %v1534_v46 = vadd.f32 %v1500_v59, %v2978_v12 }
 0x3c7   : > { %v2110_v49 = vpop.eup %2109  ;;  %v1535_v13 = vadd.f32 %v1502_v15, %v2984_v17  ;;  %v1594_v29 = vadd.f32 %v1593_v63, %v1592_v19 }
 0x3c8   : > { %v1504_v27 = vmul.f32 0.6931472, %v2110_v49  ;;  %v1595_v62 = vsel %vm1537_vm2, %v1534_v46, 0.0 }
 0x3c9   : > { %v1596_v5 = vadd.f32 %v1595_v62, %v1594_v29  ;;  %v1597_v45 = vsel %vm1537_vm2, %v1535_v13, 0.0 }
 0x3ca   : > { %v1536_v40 = vadd.f32 %v1504_v27, %v2990_v37 }
 0x3cb   : > { %v1598_v54 = vadd.f32 %v1597_v45, %v1596_v5 }
 0x3cc   : > { %v1599_v48 = vsel %vm1537_vm2, %v1536_v40, 0.0 }
 0x3cd   : > { %v1600_v53 = vadd.f32 %v1599_v48, %v1598_v54 }
 0x3cf   : > { %1601 = vadd.xlane.f32.xlu0 %v1600_v53 }
 0x45c   : > { %v1602_v12 = vpop.xlane.xlu0 %1601 }
 0x45d   : > { %v1603_v22 = vrot.slane %v1602_v12, 4 }
 0x45f   : > { %v1604_v17 = vadd.f32 %v1603_v22, %v1602_v12 }
 0x461   : > { %v1605_v56 = vrot.slane %v1604_v17, 2 }
 0x463   : > { %v1606_v55 = vadd.f32 %v1605_v56, %v1604_v17 }
 0x465   : > { %v1607_v7 = vrot.slane %v1606_v55, 1 }
 0x467   : > { %v1608_v57 = vadd.f32 %v1607_v7, %v1606_v55 }
 0x469   : > { %1781 = vpush %v1608_v57 }
 0x49a   : > { %s1782_s30 = spop %1781 }
 0x49b   : > { %v1610_v37 = vstv %s1782_s30 }
 0x49c   : > { %1611 = vst [vmem:[%s214_s21] sm:$0x1] %v1610_v37 }
 0x49d   : > { %2184 = shalt.err (!%p2181_p2)
}
 0x49e   : > { %s2185_s8 = scalar_lea.hbm %s3114_s28, 16  ;;  %s2189_s4 = scalar_lea.hbm %s3163_s2, 32 }
 0x49f   : > { %p2186_p9 = scmp.ne.s32.totalorder %s3114_s28, %s2185_s8  ;;  %p2190_p6 = scmp.lt.u32.totalorder %s3114_s28, %s3163_s2 }
 0x4a0   : > { %p2191_p13 = scmp.lt.u32.totalorder %s2189_s4, %s2185_s8  ;;  %p2193_p8 = scmp.lt.u32.totalorder %s2185_s8, %s3114_s28 }
 0x4a1   : > { %p2187_p11 = pnand %p2186_p9, %p3224_p0 }
 0x4a2   : > { %p2192_p5 = por %p2191_p13, %p2190_p6 }
 0x4a3   : > { %p2188_p3 = pneg %p2187_p11 }
 0x4a4   : > { %p2194_p7 = por %p2193_p8, %p2192_p5 }
 0x4a6   : > { %p2195_p4 = pnand %p2194_p7, %p2188_p3 }
 0x4a8   : > { %2198 = shalt.err (!%p2195_p4)
}
 0x4a9   : > { %1787 = dma.vmem_to_hbm [thread:$0]  (%p3224_p0), %s3109_s7, 16, %s3114_s28, %s1613_s29  }
 0x4aa PF: > { %s1638_s16 = sand.u32 1, %s2237_s9   ;;  %p3225_p10 = scmp.ne.s32.totalorder %s3187_s24, 0 }
 0x4ab   : > { %p3226_p12 = scmp.ge.s32.totalorder %s2257_s14, 2  ;;  %s1639_s21 = scalar_lea.sflag [#allocation4], %s1638_s16 }
 0x4ad   : > { %p1797_p1 = pnand %p3226_p12, %p3225_p10 }
 0x4af   : > { %2232 = dma.done.wait (!%p1797_p1), %s1639_s21, 16  }
 0x4b0   : > { %2234 = vsyncadd (!%p1797_p1), %s1639_s21, 4294967280  ;;  %s21_s14 = sadd.s32 1, %s2257_s14   ;;  %s3227_s9 = smov %s2241_s10 }
 0x4b1   : > { %p18_p2 = scmp.ge.s32.totalorder %s21_s14, 4   ;;  %s3228_s10 = smov %s2245_s11 }
 0x4b2   : > { %s3229_s11 = smov %s2334_s23  ;;  %s3230_s12 = smov %s2253_s13 }
 0x4b3   : > { %s3231_s13 = smov %s3233_s17  ;;  %20 = sbr.rel (!%p18_p2) target bundleno = 8 (0x8), region = 86 }
 0x4ba   :  { %1643 = vsyncpa [#allocation3], 1 }
 0x4bb   :  { %1645 = vsyncpa [#allocation3 + $0x1], 1 }
 0x4bc   :  { %1646 = vsyncpa [#allocation6], 1 }
 0x4bd   :  { %1648 = vsyncpa [#allocation6 + $0x1], 1 }
 0x4be   :  { %1649 = vsyncpa [#allocation4], 1 }
 0x4bf   :  { %1651 = vsyncpa [#allocation4 + $0x1], 1 }

</bundles_post_ra>
